<compile_context>
chip_gen: v6e
topology: v6e:2x2x1
jax: 0.10.0
libtpu: 0.0.40
codegen_flags: <defaults>
</compile_context>

<pallas_src>
import functools

import jax
import jax.numpy as jnp
from jax.experimental import pallas as pl
from jax.experimental.pallas import tpu as pltpu

NEG_INF = float("-inf")


# ---------------------------------------------------------------------------
# Fused multi-head attention + residual + LayerNorm (one kernel per MHA block)
# ---------------------------------------------------------------------------
def _mha_ln_kernel(xq_ref, xkv_ref, qm_ref, kvm_ref,
                   wq_ref, wk_ref, wv_ref, wproj_ref, g_ref, beta_ref,
                   out_ref, w_ref, *, n_heads, causal, scale):
    xq = xq_ref[...]                       # (Sq, D)
    xkv = xkv_ref[...]                     # (Sk, D)
    Sq, D = xq.shape
    Sk = xkv.shape[0]
    dk = D // n_heads

    # QKV projections (bias-free) — x read once from VMEM, all heads at once.
    q = jnp.dot(xq, wq_ref[...], preferred_element_type=jnp.float32)    # (Sq, D)
    k = jnp.dot(xkv, wk_ref[...], preferred_element_type=jnp.float32)   # (Sk, D)
    v = jnp.dot(xkv, wv_ref[...], preferred_element_type=jnp.float32)   # (Sk, D)
    wp = wproj_ref[...]                                                  # (D, D)

    # Masks hoisted out of the head loop (padded positions -> -inf scores).
    dead = (qm_ref[...] > 0.5) | (kvm_ref[...] > 0.5)                    # (Sq, Sk)
    if causal:
        row = jax.lax.broadcasted_iota(jnp.int32, (Sq, Sk), 0)
        col = jax.lax.broadcasted_iota(jnp.int32, (Sq, Sk), 1)
        dead = dead | (col > row)

    # Per-head attention, statically unrolled inside the kernel (no extra launches,
    # no HBM head-split transposes).  Out-projection accumulated per head, which is
    # mathematically identical to concat(heads) @ Wproj.
    proj = jnp.zeros((Sq, D), jnp.float32)
    for h in range(n_heads):
        sl = slice(h * dk, (h + 1) * dk)
        s = jnp.dot(q[:, sl], k[:, sl].T,
                    preferred_element_type=jnp.float32) * scale          # (Sq, Sk)
        s = jnp.where(dead, NEG_INF, s)
        # softmax; rows that are entirely -inf become NaN (matching torch.softmax)
        m = jnp.max(s, axis=-1, keepdims=True)
        p = jnp.exp(s - m)
        l = jnp.sum(p, axis=-1, keepdims=True)
        w = p / l
        w_ref[h, :, :] = w                                               # attention_weights_inter
        w_clean = jnp.where(jnp.isnan(w), 0.0, w)                        # masked_fill(isnan, 0)
        attn_h = jnp.dot(w_clean, v[:, sl],
                         preferred_element_type=jnp.float32)             # (Sq, dk)
        proj = proj + jnp.dot(attn_h, wp[sl, :],
                              preferred_element_type=jnp.float32)        # (Sq, D)

    # Fused residual add + LayerNorm epilogue (dropout is identity in eval mode).
    y = proj + xq
    mu = jnp.mean(y, axis=-1, keepdims=True)
    d = y - mu
    var = jnp.mean(d * d, axis=-1, keepdims=True)                        # biased (torch LN)
    inv = jax.lax.rsqrt(var + 1e-5)
    out_ref[...] = d * inv * g_ref[...] + beta_ref[...]


def fused_mha_ln(x_q, x_kv, q_mask, kv_mask, p, ln_g, ln_b, *, n_heads, causal):
    B, Sq, D = x_q.shape
    Sk = x_kv.shape[1]
    dk = D // n_heads
    scale = dk ** (-0.5)

    qm = q_mask.astype(jnp.float32).reshape(B, Sq, 1)    # 1.0 = padded query pos
    kvm = kv_mask.astype(jnp.float32).reshape(B, 1, Sk)  # 1.0 = padded key/value pos

    kernel = functools.partial(_mha_ln_kernel, n_heads=n_heads, causal=causal,
                               scale=scale)
    cost = pl.CostEstimate(
        flops=int(2 * B * D * D * (2 * Sq + 2 * Sk) + 4 * B * Sq * Sk * D),
        transcendentals=int(B * n_heads * Sq * Sk),
        bytes_accessed=int(4 * (2 * B * Sq * D + B * Sk * D + 4 * D * D
                                + B * n_heads * Sq * Sk + B * Sq + B * Sk + 2 * D)),
    )

    out, weights = pl.pallas_call(
        kernel,
        grid=(B,),
        in_specs=[
            pl.BlockSpec((None, Sq, D), lambda b: (b, 0, 0)),        # x_q (also residual)
            pl.BlockSpec((None, Sk, D), lambda b: (b, 0, 0)),        # x_kv
            pl.BlockSpec((None, Sq, 1), lambda b: (b, 0, 0)),        # query padding mask
            pl.BlockSpec((None, 1, Sk), lambda b: (b, 0, 0)),        # key/value padding mask
            pl.BlockSpec((D, D), lambda b: (0, 0)),                  # wq
            pl.BlockSpec((D, D), lambda b: (0, 0)),                  # wk
            pl.BlockSpec((D, D), lambda b: (0, 0)),                  # wv
            pl.BlockSpec((D, D), lambda b: (0, 0)),                  # wproj
            pl.BlockSpec((1, D), lambda b: (0, 0)),                  # LN gamma
            pl.BlockSpec((1, D), lambda b: (0, 0)),                  # LN beta
        ],
        out_specs=[
            pl.BlockSpec((None, Sq, D), lambda b: (b, 0, 0)),
            pl.BlockSpec((None, n_heads, Sq, Sk), lambda b: (b, 0, 0, 0)),
        ],
        out_shape=[
            jax.ShapeDtypeStruct((B, Sq, D), jnp.float32),
            jax.ShapeDtypeStruct((B, n_heads, Sq, Sk), jnp.float32),
        ],
        compiler_params=pltpu.CompilerParams(dimension_semantics=("parallel",)),
        cost_estimate=cost,
    )(x_q, x_kv, qm, kvm, p["wq"], p["wk"], p["wv"], p["wproj"],
      ln_g.reshape(1, D), ln_b.reshape(1, D))
    return out, weights


# ---------------------------------------------------------------------------
# Fused feed-forward + residual + LayerNorm
# ---------------------------------------------------------------------------
def _ffn_ln_kernel(x_ref, w1_ref, b1_ref, w2_ref, b2_ref, g_ref, beta_ref, o_ref):
    x = x_ref[...]                                                       # (S, D)
    h = jnp.dot(x, w1_ref[...], preferred_element_type=jnp.float32) + b1_ref[...]
    h = jnp.maximum(h, 0.0)                                              # ReLU
    y = jnp.dot(h, w2_ref[...], preferred_element_type=jnp.float32) + b2_ref[...]
    y = y + x                                                            # residual (dropout = id)
    mu = jnp.mean(y, axis=-1, keepdims=True)
    d = y - mu
    var = jnp.mean(d * d, axis=-1, keepdims=True)
    inv = jax.lax.rsqrt(var + 1e-5)
    o_ref[...] = d * inv * g_ref[...] + beta_ref[...]


def fused_ffn_ln(x, w1, b1, w2, b2, ln_g, ln_b):
    B, S, D = x.shape
    Dff = w1.shape[1]
    cost = pl.CostEstimate(
        flops=int(4 * B * S * D * Dff),
        transcendentals=int(B * S),
        bytes_accessed=int(4 * (2 * B * S * D + 2 * D * Dff + Dff + 3 * D)),
    )
    return pl.pallas_call(
        _ffn_ln_kernel,
        grid=(B,),
        in_specs=[
            pl.BlockSpec((None, S, D), lambda b: (b, 0, 0)),
            pl.BlockSpec((D, Dff), lambda b: (0, 0)),
            pl.BlockSpec((1, Dff), lambda b: (0, 0)),
            pl.BlockSpec((Dff, D), lambda b: (0, 0)),
            pl.BlockSpec((1, D), lambda b: (0, 0)),
            pl.BlockSpec((1, D), lambda b: (0, 0)),
            pl.BlockSpec((1, D), lambda b: (0, 0)),
        ],
        out_specs=pl.BlockSpec((None, S, D), lambda b: (b, 0, 0)),
        out_shape=jax.ShapeDtypeStruct((B, S, D), jnp.float32),
        compiler_params=pltpu.CompilerParams(dimension_semantics=("parallel",)),
        cost_estimate=cost,
    )(x, w1, b1, w2, b2, ln_g.reshape(1, D), ln_b.reshape(1, D))


# ---------------------------------------------------------------------------
# Decoder layer = 3 fused pallas_calls
# ---------------------------------------------------------------------------
def decoder_layer(tgt, memory, tgt_mask, mem_mask, params, *, n_heads):
    sa_norm, sa_w = fused_mha_ln(tgt, tgt, tgt_mask, tgt_mask,
                                 params["self_attn"], params["ln1_g"],
                                 params["ln1_b"], n_heads=n_heads, causal=True)
    ca_norm, ca_w = fused_mha_ln(sa_norm, memory, tgt_mask, mem_mask,
                                 params["cross_attn"], params["ln2_g"],
                                 params["ln2_b"], n_heads=n_heads, causal=False)
    out = fused_ffn_ln(ca_norm, params["ff_w1"], params["ff_b1"],
                       params["ff_w2"], params["ff_b2"],
                       params["ln3_g"], params["ln3_b"])
    return out, sa_w, ca_w


# ---------------------------------------------------------------------------
# Parameter init (matches PyTorch nn.Linear / nn.LayerNorm defaults)
# ---------------------------------------------------------------------------
def init_params(key, n_heads, d_model, d_ff):
    ks = jax.random.split(key, 12)

    def lin_w(k, din, dout):
        bound = 1.0 / (din ** 0.5)
        # stored as (in, out) so kernels compute x @ W (== x @ W_torch.T)
        return jax.random.uniform(k, (din, dout), jnp.float32, -bound, bound)

    def lin_b(k, din, dout):
        bound = 1.0 / (din ** 0.5)
        return jax.random.uniform(k, (1, dout), jnp.float32, -bound, bound)

    params = {
        "self_attn": {
            "wq": lin_w(ks[0], d_model, d_model),
            "wk": lin_w(ks[1], d_model, d_model),
            "wv": lin_w(ks[2], d_model, d_model),
            "wproj": lin_w(ks[3], d_model, d_model),
        },
        "cross_attn": {
            "wq": lin_w(ks[4], d_model, d_model),
            "wk": lin_w(ks[5], d_model, d_model),
            "wv": lin_w(ks[6], d_model, d_model),
            "wproj": lin_w(ks[7], d_model, d_model),
        },
        "ff_w1": lin_w(ks[8], d_model, d_ff),
        "ff_b1": lin_b(ks[9], d_model, d_ff),
        "ff_w2": lin_w(ks[10], d_ff, d_model),
        "ff_b2": lin_b(ks[11], d_ff, d_model),
        "ln1_g": jnp.ones((d_model,), jnp.float32),
        "ln1_b": jnp.zeros((d_model,), jnp.float32),
        "ln2_g": jnp.ones((d_model,), jnp.float32),
        "ln2_b": jnp.zeros((d_model,), jnp.float32),
        "ln3_g": jnp.ones((d_model,), jnp.float32),
        "ln3_b": jnp.zeros((d_model,), jnp.float32),
    }
    return params


if __name__ == "__main__":
    B, S_TGT, S_MEM = 2, 8, 12
    N_HEADS, D_MODEL, D_FF = 4, 32, 64

    key = jax.random.PRNGKey(0)
    k_tgt, k_mem, k_par = jax.random.split(key, 3)

    tgt = jax.random.normal(k_tgt, (B, S_TGT, D_MODEL), jnp.float32)
    memory = jax.random.normal(k_mem, (B, S_MEM, D_MODEL), jnp.float32)

    # padding masks: True = padded token (ignored)
    tgt_lens = jnp.array([8, 6])
    mem_lens = jnp.array([12, 9])
    tgt_padding_mask = jnp.arange(S_TGT)[None, :] >= tgt_lens[:, None]     # (B, S_TGT) bool
    memory_padding_mask = jnp.arange(S_MEM)[None, :] >= mem_lens[:, None]  # (B, S_MEM) bool

    params = init_params(k_par, N_HEADS, D_MODEL, D_FF)

    fwd = jax.jit(functools.partial(decoder_layer, n_heads=N_HEADS))
    out, sa_w, ca_w = fwd(tgt, memory, tgt_padding_mask, memory_padding_mask, params)
    jax.block_until_ready((out, sa_w, ca_w))

    assert out.shape == (B, S_TGT, D_MODEL)
    assert sa_w.shape == (B, N_HEADS, S_TGT, S_TGT)
    assert ca_w.shape == (B, N_HEADS, S_TGT, S_MEM)
    assert bool(jnp.all(jnp.isfinite(out)))
    print("KERNEL_OK")
</pallas_src>

<mosaic_0001>
module attributes {stable_mosaic.version = 11 : i64} {
  func.func @_mha_ln_kernel(%arg0: i32, %arg1: memref<1x8x32xf32, #tpu.memory_space<vmem>>, %arg2: memref<1x8x32xf32, #tpu.memory_space<vmem>>, %arg3: memref<1x8x1xf32, #tpu.memory_space<vmem>>, %arg4: memref<1x1x8xf32, #tpu.memory_space<vmem>>, %arg5: memref<32x32xf32, #tpu.memory_space<vmem>>, %arg6: memref<32x32xf32, #tpu.memory_space<vmem>>, %arg7: memref<32x32xf32, #tpu.memory_space<vmem>>, %arg8: memref<32x32xf32, #tpu.memory_space<vmem>>, %arg9: memref<1x32xf32, #tpu.memory_space<vmem>>, %arg10: memref<1x32xf32, #tpu.memory_space<vmem>>, %arg11: memref<1x8x32xf32, #tpu.memory_space<vmem>>, %arg12: memref<1x4x8x8xf32, #tpu.memory_space<vmem>>) attributes {dimension_semantics = [#tpu.dimension_semantics<parallel>], iteration_bounds = array<i64: 2>, scalar_prefetch = 0 : i64, scratch_operands = 0 : i64, tpu.core_type = #tpu.core_type<tc>, window_params = [{transform_indices = @transform_0, window_bounds = array<i64: 1, 8, 32>}, {transform_indices = @transform_1, window_bounds = array<i64: 1, 8, 32>}, {transform_indices = @transform_2, window_bounds = array<i64: 1, 8, 1>}, {transform_indices = @transform_3, window_bounds = array<i64: 1, 1, 8>}, {pipeline_mode = #tpu.pipeline_mode<synchronous>, transform_indices = @transform_4, window_bounds = array<i64: 32, 32>}, {pipeline_mode = #tpu.pipeline_mode<synchronous>, transform_indices = @transform_5, window_bounds = array<i64: 32, 32>}, {pipeline_mode = #tpu.pipeline_mode<synchronous>, transform_indices = @transform_6, window_bounds = array<i64: 32, 32>}, {pipeline_mode = #tpu.pipeline_mode<synchronous>, transform_indices = @transform_7, window_bounds = array<i64: 32, 32>}, {pipeline_mode = #tpu.pipeline_mode<synchronous>, transform_indices = @transform_8, window_bounds = array<i64: 1, 32>}, {pipeline_mode = #tpu.pipeline_mode<synchronous>, transform_indices = @transform_9, window_bounds = array<i64: 1, 32>}, {transform_indices = @transform_10, window_bounds = array<i64: 1, 8, 32>}, {transform_indices = @transform_11, window_bounds = array<i64: 1, 4, 8, 8>}]} {
    %c0 = arith.constant 0 : index
    %c0_0 = arith.constant 0 : index
    %c0_1 = arith.constant 0 : index
    %0 = vector.load %arg1[%c0, %c0_0, %c0_1] : memref<1x8x32xf32, #tpu.memory_space<vmem>>, vector<1x8x32xf32>
    %1 = vector.shape_cast %0 : vector<1x8x32xf32> to vector<8x32xf32>
    %c0_2 = arith.constant 0 : index
    %c0_3 = arith.constant 0 : index
    %c0_4 = arith.constant 0 : index
    %2 = vector.load %arg2[%c0_2, %c0_3, %c0_4] : memref<1x8x32xf32, #tpu.memory_space<vmem>>, vector<1x8x32xf32>
    %3 = vector.shape_cast %2 : vector<1x8x32xf32> to vector<8x32xf32>
    %c0_5 = arith.constant 0 : index
    %c0_6 = arith.constant 0 : index
    %4 = vector.load %arg5[%c0_5, %c0_6] : memref<32x32xf32, #tpu.memory_space<vmem>>, vector<32x32xf32>
    %cst = arith.constant dense<0.000000e+00> : vector<8x32xf32>
    %5 = tpu.matmul %1, %4, %cst {dimension_numbers = #tpu.dot_dimension_numbers<[1], [0], [0], [1], [0, 0, 1, 1], [], []>} : vector<8x32xf32>, vector<32x32xf32>, vector<8x32xf32> -> vector<8x32xf32>
    %c0_7 = arith.constant 0 : index
    %c0_8 = arith.constant 0 : index
    %6 = vector.load %arg6[%c0_7, %c0_8] : memref<32x32xf32, #tpu.memory_space<vmem>>, vector<32x32xf32>
    %cst_9 = arith.constant dense<0.000000e+00> : vector<8x32xf32>
    %7 = tpu.matmul %3, %6, %cst_9 {dimension_numbers = #tpu.dot_dimension_numbers<[1], [0], [0], [1], [0, 0, 1, 1], [], []>} : vector<8x32xf32>, vector<32x32xf32>, vector<8x32xf32> -> vector<8x32xf32>
    %c0_10 = arith.constant 0 : index
    %c0_11 = arith.constant 0 : index
    %8 = vector.load %arg7[%c0_10, %c0_11] : memref<32x32xf32, #tpu.memory_space<vmem>>, vector<32x32xf32>
    %cst_12 = arith.constant dense<0.000000e+00> : vector<8x32xf32>
    %9 = tpu.matmul %3, %8, %cst_12 {dimension_numbers = #tpu.dot_dimension_numbers<[1], [0], [0], [1], [0, 0, 1, 1], [], []>} : vector<8x32xf32>, vector<32x32xf32>, vector<8x32xf32> -> vector<8x32xf32>
    %c0_13 = arith.constant 0 : index
    %c0_14 = arith.constant 0 : index
    %10 = vector.load %arg8[%c0_13, %c0_14] : memref<32x32xf32, #tpu.memory_space<vmem>>, vector<32x32xf32>
    %c0_15 = arith.constant 0 : index
    %c0_16 = arith.constant 0 : index
    %c0_17 = arith.constant 0 : index
    %11 = vector.load %arg3[%c0_15, %c0_16, %c0_17] : memref<1x8x1xf32, #tpu.memory_space<vmem>>, vector<1x8x1xf32>
    %12 = vector.shape_cast %11 : vector<1x8x1xf32> to vector<8x1xf32>
    %cst_18 = arith.constant 5.000000e-01 : f32
    %13 = vector.broadcast %cst_18 : f32 to vector<8x1xf32>
    %14 = arith.cmpf ogt, %12, %13 : vector<8x1xf32>
    %c0_19 = arith.constant 0 : index
    %c0_20 = arith.constant 0 : index
    %c0_21 = arith.constant 0 : index
    %15 = vector.load %arg4[%c0_19, %c0_20, %c0_21] : memref<1x1x8xf32, #tpu.memory_space<vmem>>, vector<1x1x8xf32>
    %16 = vector.shape_cast %15 : vector<1x1x8xf32> to vector<1x8xf32>
    %cst_22 = arith.constant 5.000000e-01 : f32
    %17 = vector.broadcast %cst_22 : f32 to vector<1x8xf32>
    %18 = arith.cmpf ogt, %16, %17 : vector<1x8xf32>
    %19 = vector.broadcast %14 : vector<8x1xi1> to vector<8x8xi1>
    %20 = vector.broadcast %18 : vector<1x8xi1> to vector<8x8xi1>
    %21 = arith.ori %19, %20 : vector<8x8xi1>
    %22 = tpu.iota {dimensions = array<i32: 0>} : vector<8x8xi32>
    %23 = tpu.iota {dimensions = array<i32: 1>} : vector<8x8xi32>
    %24 = arith.cmpi sgt, %23, %22 : vector<8x8xi32>
    %25 = arith.ori %21, %24 : vector<8x8xi1>
    %cst_23 = arith.constant 0.000000e+00 : f32
    %26 = vector.broadcast %cst_23 : f32 to vector<8x32xf32>
    %27 = vector.extract_strided_slice %5 {offsets = [0, 0], sizes = [8, 8], strides = [1, 1]} : vector<8x32xf32> to vector<8x8xf32>
    %28 = vector.extract_strided_slice %7 {offsets = [0, 0], sizes = [8, 8], strides = [1, 1]} : vector<8x32xf32> to vector<8x8xf32>
    %29 = tpu.transpose %28, [1, 0] : vector<8x8xf32> -> vector<8x8xf32>
    %cst_24 = arith.constant dense<0.000000e+00> : vector<8x8xf32>
    %30 = tpu.matmul %27, %29, %cst_24 {dimension_numbers = #tpu.dot_dimension_numbers<[1], [0], [0], [1], [0, 0, 1, 1], [], []>} : vector<8x8xf32>, vector<8x8xf32>, vector<8x8xf32> -> vector<8x8xf32>
    %cst_25 = arith.constant 0.353553385 : f32
    %31 = vector.broadcast %cst_25 : f32 to vector<8x8xf32>
    %32 = arith.mulf %30, %31 : vector<8x8xf32>
    %cst_26 = arith.constant 0xFF800000 : f32
    %33 = vector.broadcast %cst_26 : f32 to vector<8x8xf32>
    %34 = arith.select %25, %33, %32 : vector<8x8xi1>, vector<8x8xf32>
    %cst_27 = arith.constant dense<0xFF800000> : vector<8xf32>
    %35 = vector.multi_reduction <maximumf>, %34, %cst_27 [1] : vector<8x8xf32> to vector<8xf32>
    %36 = vector.shape_cast %35 : vector<8xf32> to vector<8x1xf32>
    %37 = vector.broadcast %36 : vector<8x1xf32> to vector<8x8xf32>
    %38 = arith.subf %34, %37 : vector<8x8xf32>
    %39 = math.exp %38 : vector<8x8xf32>
    %cst_28 = arith.constant dense<0.000000e+00> : vector<8xf32>
    %40 = vector.multi_reduction <add>, %39, %cst_28 [1] : vector<8x8xf32> to vector<8xf32>
    %41 = vector.shape_cast %40 : vector<8xf32> to vector<8x1xf32>
    %42 = vector.broadcast %41 : vector<8x1xf32> to vector<8x8xf32>
    %43 = arith.divf %39, %42 : vector<8x8xf32>
    %c0_29 = arith.constant 0 : index
    %c0_30 = arith.constant 0 : index
    %c0_31 = arith.constant 0 : index
    %c0_32 = arith.constant 0 : index
    %44 = vector.load %arg12[%c0_29, %c0_30, %c0_31, %c0_32] : memref<1x4x8x8xf32, #tpu.memory_space<vmem>>, vector<1x1x8x8xf32>
    %45 = vector.shape_cast %44 : vector<1x1x8x8xf32> to vector<8x8xf32>
    %46 = vector.shape_cast %43 : vector<8x8xf32> to vector<1x1x8x8xf32>
    tpu.vector_store %arg12[%c0_29, %c0_30, %c0_31, %c0_32], %46 {strides = array<i32>} : memref<1x4x8x8xf32, #tpu.memory_space<vmem>>, vector<1x1x8x8xf32>,
    %47 = arith.cmpf one, %43, %43 : vector<8x8xf32>
    %cst_33 = arith.constant 0.000000e+00 : f32
    %48 = vector.broadcast %cst_33 : f32 to vector<8x8xf32>
    %49 = arith.select %47, %48, %43 : vector<8x8xi1>, vector<8x8xf32>
    %50 = vector.extract_strided_slice %9 {offsets = [0, 0], sizes = [8, 8], strides = [1, 1]} : vector<8x32xf32> to vector<8x8xf32>
    %cst_34 = arith.constant dense<0.000000e+00> : vector<8x8xf32>
    %51 = tpu.matmul %49, %50, %cst_34 {dimension_numbers = #tpu.dot_dimension_numbers<[1], [0], [0], [1], [0, 0, 1, 1], [], []>} : vector<8x8xf32>, vector<8x8xf32>, vector<8x8xf32> -> vector<8x8xf32>
    %52 = vector.extract_strided_slice %10 {offsets = [0, 0], sizes = [8, 32], strides = [1, 1]} : vector<32x32xf32> to vector<8x32xf32>
    %cst_35 = arith.constant dense<0.000000e+00> : vector<8x32xf32>
    %53 = tpu.matmul %51, %52, %cst_35 {dimension_numbers = #tpu.dot_dimension_numbers<[1], [0], [0], [1], [0, 0, 1, 1], [], []>} : vector<8x8xf32>, vector<8x32xf32>, vector<8x32xf32> -> vector<8x32xf32>
    %54 = arith.addf %26, %53 : vector<8x32xf32>
    %55 = vector.extract_strided_slice %5 {offsets = [0, 8], sizes = [8, 8], strides = [1, 1]} : vector<8x32xf32> to vector<8x8xf32>
    %56 = vector.extract_strided_slice %7 {offsets = [0, 8], sizes = [8, 8], strides = [1, 1]} : vector<8x32xf32> to vector<8x8xf32>
    %57 = tpu.transpose %56, [1, 0] : vector<8x8xf32> -> vector<8x8xf32>
    %cst_36 = arith.constant dense<0.000000e+00> : vector<8x8xf32>
    %58 = tpu.matmul %55, %57, %cst_36 {dimension_numbers = #tpu.dot_dimension_numbers<[1], [0], [0], [1], [0, 0, 1, 1], [], []>} : vector<8x8xf32>, vector<8x8xf32>, vector<8x8xf32> -> vector<8x8xf32>
    %cst_37 = arith.constant 0.353553385 : f32
    %59 = vector.broadcast %cst_37 : f32 to vector<8x8xf32>
    %60 = arith.mulf %58, %59 : vector<8x8xf32>
    %cst_38 = arith.constant 0xFF800000 : f32
    %61 = vector.broadcast %cst_38 : f32 to vector<8x8xf32>
    %62 = arith.select %25, %61, %60 : vector<8x8xi1>, vector<8x8xf32>
    %cst_39 = arith.constant dense<0xFF800000> : vector<8xf32>
    %63 = vector.multi_reduction <maximumf>, %62, %cst_39 [1] : vector<8x8xf32> to vector<8xf32>
    %64 = vector.shape_cast %63 : vector<8xf32> to vector<8x1xf32>
    %65 = vector.broadcast %64 : vector<8x1xf32> to vector<8x8xf32>
    %66 = arith.subf %62, %65 : vector<8x8xf32>
    %67 = math.exp %66 : vector<8x8xf32>
    %cst_40 = arith.constant dense<0.000000e+00> : vector<8xf32>
    %68 = vector.multi_reduction <add>, %67, %cst_40 [1] : vector<8x8xf32> to vector<8xf32>
    %69 = vector.shape_cast %68 : vector<8xf32> to vector<8x1xf32>
    %70 = vector.broadcast %69 : vector<8x1xf32> to vector<8x8xf32>
    %71 = arith.divf %67, %70 : vector<8x8xf32>
    %c0_41 = arith.constant 0 : index
    %c1 = arith.constant 1 : index
    %c0_42 = arith.constant 0 : index
    %c0_43 = arith.constant 0 : index
    %72 = vector.load %arg12[%c0_41, %c1, %c0_42, %c0_43] : memref<1x4x8x8xf32, #tpu.memory_space<vmem>>, vector<1x1x8x8xf32>
    %73 = vector.shape_cast %72 : vector<1x1x8x8xf32> to vector<8x8xf32>
    %74 = vector.shape_cast %71 : vector<8x8xf32> to vector<1x1x8x8xf32>
    tpu.vector_store %arg12[%c0_41, %c1, %c0_42, %c0_43], %74 {strides = array<i32>} : memref<1x4x8x8xf32, #tpu.memory_space<vmem>>, vector<1x1x8x8xf32>,
    %75 = arith.cmpf one, %71, %71 : vector<8x8xf32>
    %cst_44 = arith.constant 0.000000e+00 : f32
    %76 = vector.broadcast %cst_44 : f32 to vector<8x8xf32>
    %77 = arith.select %75, %76, %71 : vector<8x8xi1>, vector<8x8xf32>
    %78 = vector.extract_strided_slice %9 {offsets = [0, 8], sizes = [8, 8], strides = [1, 1]} : vector<8x32xf32> to vector<8x8xf32>
    %cst_45 = arith.constant dense<0.000000e+00> : vector<8x8xf32>
    %79 = tpu.matmul %77, %78, %cst_45 {dimension_numbers = #tpu.dot_dimension_numbers<[1], [0], [0], [1], [0, 0, 1, 1], [], []>} : vector<8x8xf32>, vector<8x8xf32>, vector<8x8xf32> -> vector<8x8xf32>
    %80 = vector.extract_strided_slice %10 {offsets = [8, 0], sizes = [8, 32], strides = [1, 1]} : vector<32x32xf32> to vector<8x32xf32>
    %cst_46 = arith.constant dense<0.000000e+00> : vector<8x32xf32>
    %81 = tpu.matmul %79, %80, %cst_46 {dimension_numbers = #tpu.dot_dimension_numbers<[1], [0], [0], [1], [0, 0, 1, 1], [], []>} : vector<8x8xf32>, vector<8x32xf32>, vector<8x32xf32> -> vector<8x32xf32>
    %82 = arith.addf %54, %81 : vector<8x32xf32>
    %83 = vector.extract_strided_slice %5 {offsets = [0, 16], sizes = [8, 8], strides = [1, 1]} : vector<8x32xf32> to vector<8x8xf32>
    %84 = vector.extract_strided_slice %7 {offsets = [0, 16], sizes = [8, 8], strides = [1, 1]} : vector<8x32xf32> to vector<8x8xf32>
    %85 = tpu.transpose %84, [1, 0] : vector<8x8xf32> -> vector<8x8xf32>
    %cst_47 = arith.constant dense<0.000000e+00> : vector<8x8xf32>
    %86 = tpu.matmul %83, %85, %cst_47 {dimension_numbers = #tpu.dot_dimension_numbers<[1], [0], [0], [1], [0, 0, 1, 1], [], []>} : vector<8x8xf32>, vector<8x8xf32>, vector<8x8xf32> -> vector<8x8xf32>
    %cst_48 = arith.constant 0.353553385 : f32
    %87 = vector.broadcast %cst_48 : f32 to vector<8x8xf32>
    %88 = arith.mulf %86, %87 : vector<8x8xf32>
    %cst_49 = arith.constant 0xFF800000 : f32
    %89 = vector.broadcast %cst_49 : f32 to vector<8x8xf32>
    %90 = arith.select %25, %89, %88 : vector<8x8xi1>, vector<8x8xf32>
    %cst_50 = arith.constant dense<0xFF800000> : vector<8xf32>
    %91 = vector.multi_reduction <maximumf>, %90, %cst_50 [1] : vector<8x8xf32> to vector<8xf32>
    %92 = vector.shape_cast %91 : vector<8xf32> to vector<8x1xf32>
    %93 = vector.broadcast %92 : vector<8x1xf32> to vector<8x8xf32>
    %94 = arith.subf %90, %93 : vector<8x8xf32>
    %95 = math.exp %94 : vector<8x8xf32>
    %cst_51 = arith.constant dense<0.000000e+00> : vector<8xf32>
    %96 = vector.multi_reduction <add>, %95, %cst_51 [1] : vector<8x8xf32> to vector<8xf32>
    %97 = vector.shape_cast %96 : vector<8xf32> to vector<8x1xf32>
    %98 = vector.broadcast %97 : vector<8x1xf32> to vector<8x8xf32>
    %99 = arith.divf %95, %98 : vector<8x8xf32>
    %c0_52 = arith.constant 0 : index
    %c2 = arith.constant 2 : index
    %c0_53 = arith.constant 0 : index
    %c0_54 = arith.constant 0 : index
    %100 = vector.load %arg12[%c0_52, %c2, %c0_53, %c0_54] : memref<1x4x8x8xf32, #tpu.memory_space<vmem>>, vector<1x1x8x8xf32>
    %101 = vector.shape_cast %100 : vector<1x1x8x8xf32> to vector<8x8xf32>
    %102 = vector.shape_cast %99 : vector<8x8xf32> to vector<1x1x8x8xf32>
    tpu.vector_store %arg12[%c0_52, %c2, %c0_53, %c0_54], %102 {strides = array<i32>} : memref<1x4x8x8xf32, #tpu.memory_space<vmem>>, vector<1x1x8x8xf32>,
    %103 = arith.cmpf one, %99, %99 : vector<8x8xf32>
    %cst_55 = arith.constant 0.000000e+00 : f32
    %104 = vector.broadcast %cst_55 : f32 to vector<8x8xf32>
    %105 = arith.select %103, %104, %99 : vector<8x8xi1>, vector<8x8xf32>
    %106 = vector.extract_strided_slice %9 {offsets = [0, 16], sizes = [8, 8], strides = [1, 1]} : vector<8x32xf32> to vector<8x8xf32>
    %cst_56 = arith.constant dense<0.000000e+00> : vector<8x8xf32>
    %107 = tpu.matmul %105, %106, %cst_56 {dimension_numbers = #tpu.dot_dimension_numbers<[1], [0], [0], [1], [0, 0, 1, 1], [], []>} : vector<8x8xf32>, vector<8x8xf32>, vector<8x8xf32> -> vector<8x8xf32>
    %108 = vector.extract_strided_slice %10 {offsets = [16, 0], sizes = [8, 32], strides = [1, 1]} : vector<32x32xf32> to vector<8x32xf32>
    %cst_57 = arith.constant dense<0.000000e+00> : vector<8x32xf32>
    %109 = tpu.matmul %107, %108, %cst_57 {dimension_numbers = #tpu.dot_dimension_numbers<[1], [0], [0], [1], [0, 0, 1, 1], [], []>} : vector<8x8xf32>, vector<8x32xf32>, vector<8x32xf32> -> vector<8x32xf32>
    %110 = arith.addf %82, %109 : vector<8x32xf32>
    %111 = vector.extract_strided_slice %5 {offsets = [0, 24], sizes = [8, 8], strides = [1, 1]} : vector<8x32xf32> to vector<8x8xf32>
    %112 = vector.extract_strided_slice %7 {offsets = [0, 24], sizes = [8, 8], strides = [1, 1]} : vector<8x32xf32> to vector<8x8xf32>
    %113 = tpu.transpose %112, [1, 0] : vector<8x8xf32> -> vector<8x8xf32>
    %cst_58 = arith.constant dense<0.000000e+00> : vector<8x8xf32>
    %114 = tpu.matmul %111, %113, %cst_58 {dimension_numbers = #tpu.dot_dimension_numbers<[1], [0], [0], [1], [0, 0, 1, 1], [], []>} : vector<8x8xf32>, vector<8x8xf32>, vector<8x8xf32> -> vector<8x8xf32>
    %cst_59 = arith.constant 0.353553385 : f32
    %115 = vector.broadcast %cst_59 : f32 to vector<8x8xf32>
    %116 = arith.mulf %114, %115 : vector<8x8xf32>
    %cst_60 = arith.constant 0xFF800000 : f32
    %117 = vector.broadcast %cst_60 : f32 to vector<8x8xf32>
    %118 = arith.select %25, %117, %116 : vector<8x8xi1>, vector<8x8xf32>
    %cst_61 = arith.constant dense<0xFF800000> : vector<8xf32>
    %119 = vector.multi_reduction <maximumf>, %118, %cst_61 [1] : vector<8x8xf32> to vector<8xf32>
    %120 = vector.shape_cast %119 : vector<8xf32> to vector<8x1xf32>
    %121 = vector.broadcast %120 : vector<8x1xf32> to vector<8x8xf32>
    %122 = arith.subf %118, %121 : vector<8x8xf32>
    %123 = math.exp %122 : vector<8x8xf32>
    %cst_62 = arith.constant dense<0.000000e+00> : vector<8xf32>
    %124 = vector.multi_reduction <add>, %123, %cst_62 [1] : vector<8x8xf32> to vector<8xf32>
    %125 = vector.shape_cast %124 : vector<8xf32> to vector<8x1xf32>
    %126 = vector.broadcast %125 : vector<8x1xf32> to vector<8x8xf32>
    %127 = arith.divf %123, %126 : vector<8x8xf32>
    %c0_63 = arith.constant 0 : index
    %c3 = arith.constant 3 : index
    %c0_64 = arith.constant 0 : index
    %c0_65 = arith.constant 0 : index
    %128 = vector.load %arg12[%c0_63, %c3, %c0_64, %c0_65] : memref<1x4x8x8xf32, #tpu.memory_space<vmem>>, vector<1x1x8x8xf32>
    %129 = vector.shape_cast %128 : vector<1x1x8x8xf32> to vector<8x8xf32>
    %130 = vector.shape_cast %127 : vector<8x8xf32> to vector<1x1x8x8xf32>
    tpu.vector_store %arg12[%c0_63, %c3, %c0_64, %c0_65], %130 {strides = array<i32>} : memref<1x4x8x8xf32, #tpu.memory_space<vmem>>, vector<1x1x8x8xf32>,
    %131 = arith.cmpf one, %127, %127 : vector<8x8xf32>
    %cst_66 = arith.constant 0.000000e+00 : f32
    %132 = vector.broadcast %cst_66 : f32 to vector<8x8xf32>
    %133 = arith.select %131, %132, %127 : vector<8x8xi1>, vector<8x8xf32>
    %134 = vector.extract_strided_slice %9 {offsets = [0, 24], sizes = [8, 8], strides = [1, 1]} : vector<8x32xf32> to vector<8x8xf32>
    %cst_67 = arith.constant dense<0.000000e+00> : vector<8x8xf32>
    %135 = tpu.matmul %133, %134, %cst_67 {dimension_numbers = #tpu.dot_dimension_numbers<[1], [0], [0], [1], [0, 0, 1, 1], [], []>} : vector<8x8xf32>, vector<8x8xf32>, vector<8x8xf32> -> vector<8x8xf32>
    %136 = vector.extract_strided_slice %10 {offsets = [24, 0], sizes = [8, 32], strides = [1, 1]} : vector<32x32xf32> to vector<8x32xf32>
    %cst_68 = arith.constant dense<0.000000e+00> : vector<8x32xf32>
    %137 = tpu.matmul %135, %136, %cst_68 {dimension_numbers = #tpu.dot_dimension_numbers<[1], [0], [0], [1], [0, 0, 1, 1], [], []>} : vector<8x8xf32>, vector<8x32xf32>, vector<8x32xf32> -> vector<8x32xf32>
    %138 = arith.addf %110, %137 : vector<8x32xf32>
    %139 = arith.addf %138, %1 : vector<8x32xf32>
    %cst_69 = arith.constant dense<0.000000e+00> : vector<8xf32>
    %140 = vector.multi_reduction <add>, %139, %cst_69 [1] : vector<8x32xf32> to vector<8xf32>
    %141 = vector.shape_cast %140 : vector<8xf32> to vector<8x1xf32>
    %cst_70 = arith.constant 3.200000e+01 : f32
    %142 = vector.broadcast %cst_70 : f32 to vector<8x1xf32>
    %143 = arith.divf %141, %142 : vector<8x1xf32>
    %144 = vector.broadcast %143 : vector<8x1xf32> to vector<8x32xf32>
    %145 = arith.subf %139, %144 : vector<8x32xf32>
    %146 = arith.mulf %145, %145 : vector<8x32xf32>
    %cst_71 = arith.constant dense<0.000000e+00> : vector<8xf32>
    %147 = vector.multi_reduction <add>, %146, %cst_71 [1] : vector<8x32xf32> to vector<8xf32>
    %148 = vector.shape_cast %147 : vector<8xf32> to vector<8x1xf32>
    %cst_72 = arith.constant 3.200000e+01 : f32
    %149 = vector.broadcast %cst_72 : f32 to vector<8x1xf32>
    %150 = arith.divf %148, %149 : vector<8x1xf32>
    %cst_73 = arith.constant 9.99999974E-6 : f32
    %151 = vector.broadcast %cst_73 : f32 to vector<8x1xf32>
    %152 = arith.addf %150, %151 : vector<8x1xf32>
    %153 = math.rsqrt %152 : vector<8x1xf32>
    %154 = vector.broadcast %153 : vector<8x1xf32> to vector<8x32xf32>
    %155 = arith.mulf %145, %154 : vector<8x32xf32>
    %c0_74 = arith.constant 0 : index
    %c0_75 = arith.constant 0 : index
    %156 = vector.load %arg9[%c0_74, %c0_75] : memref<1x32xf32, #tpu.memory_space<vmem>>, vector<1x32xf32>
    %157 = vector.broadcast %156 : vector<1x32xf32> to vector<8x32xf32>
    %158 = arith.mulf %155, %157 : vector<8x32xf32>
    %c0_76 = arith.constant 0 : index
    %c0_77 = arith.constant 0 : index
    %159 = vector.load %arg10[%c0_76, %c0_77] : memref<1x32xf32, #tpu.memory_space<vmem>>, vector<1x32xf32>
    %160 = vector.broadcast %159 : vector<1x32xf32> to vector<8x32xf32>
    %161 = arith.addf %158, %160 : vector<8x32xf32>
    %c0_78 = arith.constant 0 : index
    %c0_79 = arith.constant 0 : index
    %c0_80 = arith.constant 0 : index
    %162 = vector.load %arg11[%c0_78, %c0_79, %c0_80] : memref<1x8x32xf32, #tpu.memory_space<vmem>>, vector<1x8x32xf32>
    %163 = vector.shape_cast %162 : vector<1x8x32xf32> to vector<8x32xf32>
    %164 = vector.shape_cast %161 : vector<8x32xf32> to vector<1x8x32xf32>
    tpu.vector_store %arg11[%c0_78, %c0_79, %c0_80], %164 {strides = array<i32>} : memref<1x8x32xf32, #tpu.memory_space<vmem>>, vector<1x8x32xf32>,
    return
  }
  func.func @transform_0(%arg0: i32) -> (i32, i32, i32) {
    %c0_i32 = arith.constant 0 : i32
    %c0_i32_0 = arith.constant 0 : i32
    %c0_i32_1 = arith.constant 0 : i32
    return %arg0, %c0_i32, %c0_i32_0 : i32, i32, i32
  }
  func.func @transform_1(%arg0: i32) -> (i32, i32, i32) {
    %c0_i32 = arith.constant 0 : i32
    %c0_i32_0 = arith.constant 0 : i32
    %c0_i32_1 = arith.constant 0 : i32
    return %arg0, %c0_i32, %c0_i32_0 : i32, i32, i32
  }
  func.func @transform_2(%arg0: i32) -> (i32, i32, i32) {
    %c0_i32 = arith.constant 0 : i32
    %c0_i32_0 = arith.constant 0 : i32
    %c0_i32_1 = arith.constant 0 : i32
    return %arg0, %c0_i32, %c0_i32_0 : i32, i32, i32
  }
  func.func @transform_3(%arg0: i32) -> (i32, i32, i32) {
    %c0_i32 = arith.constant 0 : i32
    %c0_i32_0 = arith.constant 0 : i32
    %c0_i32_1 = arith.constant 0 : i32
    return %arg0, %c0_i32, %c0_i32_0 : i32, i32, i32
  }
  func.func @transform_4(%arg0: i32) -> (i32, i32) {
    %c0_i32 = arith.constant 0 : i32
    %c0_i32_0 = arith.constant 0 : i32
    %c0_i32_1 = arith.constant 0 : i32
    return %c0_i32, %c0_i32_0 : i32, i32
  }
  func.func @transform_5(%arg0: i32) -> (i32, i32) {
    %c0_i32 = arith.constant 0 : i32
    %c0_i32_0 = arith.constant 0 : i32
    %c0_i32_1 = arith.constant 0 : i32
    return %c0_i32, %c0_i32_0 : i32, i32
  }
  func.func @transform_6(%arg0: i32) -> (i32, i32) {
    %c0_i32 = arith.constant 0 : i32
    %c0_i32_0 = arith.constant 0 : i32
    %c0_i32_1 = arith.constant 0 : i32
    return %c0_i32, %c0_i32_0 : i32, i32
  }
  func.func @transform_7(%arg0: i32) -> (i32, i32) {
    %c0_i32 = arith.constant 0 : i32
    %c0_i32_0 = arith.constant 0 : i32
    %c0_i32_1 = arith.constant 0 : i32
    return %c0_i32, %c0_i32_0 : i32, i32
  }
  func.func @transform_8(%arg0: i32) -> (i32, i32) {
    %c0_i32 = arith.constant 0 : i32
    %c0_i32_0 = arith.constant 0 : i32
    %c0_i32_1 = arith.constant 0 : i32
    return %c0_i32, %c0_i32_0 : i32, i32
  }
  func.func @transform_9(%arg0: i32) -> (i32, i32) {
    %c0_i32 = arith.constant 0 : i32
    %c0_i32_0 = arith.constant 0 : i32
    %c0_i32_1 = arith.constant 0 : i32
    return %c0_i32, %c0_i32_0 : i32, i32
  }
  func.func @transform_10(%arg0: i32) -> (i32, i32, i32) {
    %c0_i32 = arith.constant 0 : i32
    %c0_i32_0 = arith.constant 0 : i32
    %c0_i32_1 = arith.constant 0 : i32
    return %arg0, %c0_i32, %c0_i32_0 : i32, i32, i32
  }
  func.func @transform_11(%arg0: i32) -> (i32, i32, i32, i32) {
    %c0_i32 = arith.constant 0 : i32
    %c0_i32_0 = arith.constant 0 : i32
    %c0_i32_1 = arith.constant 0 : i32
    %c0_i32_2 = arith.constant 0 : i32
    return %arg0, %c0_i32, %c0_i32_0, %c0_i32_1 : i32, i32, i32, i32
  }
}

module attributes {stable_mosaic.version = 11 : i64} {
  func.func @_mha_ln_kernel(%arg0: i32, %arg1: memref<1x8x32xf32, #tpu.memory_space<vmem>>, %arg2: memref<1x12x32xf32, #tpu.memory_space<vmem>>, %arg3: memref<1x8x1xf32, #tpu.memory_space<vmem>>, %arg4: memref<1x1x12xf32, #tpu.memory_space<vmem>>, %arg5: memref<32x32xf32, #tpu.memory_space<vmem>>, %arg6: memref<32x32xf32, #tpu.memory_space<vmem>>, %arg7: memref<32x32xf32, #tpu.memory_space<vmem>>, %arg8: memref<32x32xf32, #tpu.memory_space<vmem>>, %arg9: memref<1x32xf32, #tpu.memory_space<vmem>>, %arg10: memref<1x32xf32, #tpu.memory_space<vmem>>, %arg11: memref<1x8x32xf32, #tpu.memory_space<vmem>>, %arg12: memref<1x4x8x12xf32, #tpu.memory_space<vmem>>) attributes {dimension_semantics = [#tpu.dimension_semantics<parallel>], iteration_bounds = array<i64: 2>, scalar_prefetch = 0 : i64, scratch_operands = 0 : i64, tpu.core_type = #tpu.core_type<tc>, window_params = [{transform_indices = @transform_0, window_bounds = array<i64: 1, 8, 32>}, {transform_indices = @transform_1, window_bounds = array<i64: 1, 12, 32>}, {transform_indices = @transform_2, window_bounds = array<i64: 1, 8, 1>}, {transform_indices = @transform_3, window_bounds = array<i64: 1, 1, 12>}, {pipeline_mode = #tpu.pipeline_mode<synchronous>, transform_indices = @transform_4, window_bounds = array<i64: 32, 32>}, {pipeline_mode = #tpu.pipeline_mode<synchronous>, transform_indices = @transform_5, window_bounds = array<i64: 32, 32>}, {pipeline_mode = #tpu.pipeline_mode<synchronous>, transform_indices = @transform_6, window_bounds = array<i64: 32, 32>}, {pipeline_mode = #tpu.pipeline_mode<synchronous>, transform_indices = @transform_7, window_bounds = array<i64: 32, 32>}, {pipeline_mode = #tpu.pipeline_mode<synchronous>, transform_indices = @transform_8, window_bounds = array<i64: 1, 32>}, {pipeline_mode = #tpu.pipeline_mode<synchronous>, transform_indices = @transform_9, window_bounds = array<i64: 1, 32>}, {transform_indices = @transform_10, window_bounds = array<i64: 1, 8, 32>}, {transform_indices = @transform_11, window_bounds = array<i64: 1, 4, 8, 12>}]} {
    %c0 = arith.constant 0 : index
    %c0_0 = arith.constant 0 : index
    %c0_1 = arith.constant 0 : index
    %0 = vector.load %arg1[%c0, %c0_0, %c0_1] : memref<1x8x32xf32, #tpu.memory_space<vmem>>, vector<1x8x32xf32>
    %1 = vector.shape_cast %0 : vector<1x8x32xf32> to vector<8x32xf32>
    %c0_2 = arith.constant 0 : index
    %c0_3 = arith.constant 0 : index
    %c0_4 = arith.constant 0 : index
    %2 = vector.load %arg2[%c0_2, %c0_3, %c0_4] : memref<1x12x32xf32, #tpu.memory_space<vmem>>, vector<1x12x32xf32>
    %3 = vector.shape_cast %2 : vector<1x12x32xf32> to vector<12x32xf32>
    %c0_5 = arith.constant 0 : index
    %c0_6 = arith.constant 0 : index
    %4 = vector.load %arg5[%c0_5, %c0_6] : memref<32x32xf32, #tpu.memory_space<vmem>>, vector<32x32xf32>
    %cst = arith.constant dense<0.000000e+00> : vector<8x32xf32>
    %5 = tpu.matmul %1, %4, %cst {dimension_numbers = #tpu.dot_dimension_numbers<[1], [0], [0], [1], [0, 0, 1, 1], [], []>} : vector<8x32xf32>, vector<32x32xf32>, vector<8x32xf32> -> vector<8x32xf32>
    %c0_7 = arith.constant 0 : index
    %c0_8 = arith.constant 0 : index
    %6 = vector.load %arg6[%c0_7, %c0_8] : memref<32x32xf32, #tpu.memory_space<vmem>>, vector<32x32xf32>
    %cst_9 = arith.constant dense<0.000000e+00> : vector<12x32xf32>
    %7 = tpu.matmul %3, %6, %cst_9 {dimension_numbers = #tpu.dot_dimension_numbers<[1], [0], [0], [1], [0, 0, 1, 1], [], []>} : vector<12x32xf32>, vector<32x32xf32>, vector<12x32xf32> -> vector<12x32xf32>
    %c0_10 = arith.constant 0 : index
    %c0_11 = arith.constant 0 : index
    %8 = vector.load %arg7[%c0_10, %c0_11] : memref<32x32xf32, #tpu.memory_space<vmem>>, vector<32x32xf32>
    %cst_12 = arith.constant dense<0.000000e+00> : vector<12x32xf32>
    %9 = tpu.matmul %3, %8, %cst_12 {dimension_numbers = #tpu.dot_dimension_numbers<[1], [0], [0], [1], [0, 0, 1, 1], [], []>} : vector<12x32xf32>, vector<32x32xf32>, vector<12x32xf32> -> vector<12x32xf32>
    %c0_13 = arith.constant 0 : index
    %c0_14 = arith.constant 0 : index
    %10 = vector.load %arg8[%c0_13, %c0_14] : memref<32x32xf32, #tpu.memory_space<vmem>>, vector<32x32xf32>
    %c0_15 = arith.constant 0 : index
    %c0_16 = arith.constant 0 : index
    %c0_17 = arith.constant 0 : index
    %11 = vector.load %arg3[%c0_15, %c0_16, %c0_17] : memref<1x8x1xf32, #tpu.memory_space<vmem>>, vector<1x8x1xf32>
    %12 = vector.shape_cast %11 : vector<1x8x1xf32> to vector<8x1xf32>
    %cst_18 = arith.constant 5.000000e-01 : f32
    %13 = vector.broadcast %cst_18 : f32 to vector<8x1xf32>
    %14 = arith.cmpf ogt, %12, %13 : vector<8x1xf32>
    %c0_19 = arith.constant 0 : index
    %c0_20 = arith.constant 0 : index
    %c0_21 = arith.constant 0 : index
    %15 = vector.load %arg4[%c0_19, %c0_20, %c0_21] : memref<1x1x12xf32, #tpu.memory_space<vmem>>, vector<1x1x12xf32>
    %16 = vector.shape_cast %15 : vector<1x1x12xf32> to vector<1x12xf32>
    %cst_22 = arith.constant 5.000000e-01 : f32
    %17 = vector.broadcast %cst_22 : f32 to vector<1x12xf32>
    %18 = arith.cmpf ogt, %16, %17 : vector<1x12xf32>
    %19 = vector.broadcast %14 : vector<8x1xi1> to vector<8x12xi1>
    %20 = vector.broadcast %18 : vector<1x12xi1> to vector<8x12xi1>
    %21 = arith.ori %19, %20 : vector<8x12xi1>
    %cst_23 = arith.constant 0.000000e+00 : f32
    %22 = vector.broadcast %cst_23 : f32 to vector<8x32xf32>
    %23 = vector.extract_strided_slice %5 {offsets = [0, 0], sizes = [8, 8], strides = [1, 1]} : vector<8x32xf32> to vector<8x8xf32>
    %24 = vector.extract_strided_slice %7 {offsets = [0, 0], sizes = [12, 8], strides = [1, 1]} : vector<12x32xf32> to vector<12x8xf32>
    %25 = tpu.transpose %24, [1, 0] : vector<12x8xf32> -> vector<8x12xf32>
    %cst_24 = arith.constant dense<0.000000e+00> : vector<8x12xf32>
    %26 = tpu.matmul %23, %25, %cst_24 {dimension_numbers = #tpu.dot_dimension_numbers<[1], [0], [0], [1], [0, 0, 1, 1], [], []>} : vector<8x8xf32>, vector<8x12xf32>, vector<8x12xf32> -> vector<8x12xf32>
    %cst_25 = arith.constant 0.353553385 : f32
    %27 = vector.broadcast %cst_25 : f32 to vector<8x12xf32>
    %28 = arith.mulf %26, %27 : vector<8x12xf32>
    %cst_26 = arith.constant 0xFF800000 : f32
    %29 = vector.broadcast %cst_26 : f32 to vector<8x12xf32>
    %30 = arith.select %21, %29, %28 : vector<8x12xi1>, vector<8x12xf32>
    %cst_27 = arith.constant dense<0xFF800000> : vector<8xf32>
    %31 = vector.multi_reduction <maximumf>, %30, %cst_27 [1] : vector<8x12xf32> to vector<8xf32>
    %32 = vector.shape_cast %31 : vector<8xf32> to vector<8x1xf32>
    %33 = vector.broadcast %32 : vector<8x1xf32> to vector<8x12xf32>
    %34 = arith.subf %30, %33 : vector<8x12xf32>
    %35 = math.exp %34 : vector<8x12xf32>
    %cst_28 = arith.constant dense<0.000000e+00> : vector<8xf32>
    %36 = vector.multi_reduction <add>, %35, %cst_28 [1] : vector<8x12xf32> to vector<8xf32>
    %37 = vector.shape_cast %36 : vector<8xf32> to vector<8x1xf32>
    %38 = vector.broadcast %37 : vector<8x1xf32> to vector<8x12xf32>
    %39 = arith.divf %35, %38 : vector<8x12xf32>
    %c0_29 = arith.constant 0 : index
    %c0_30 = arith.constant 0 : index
    %c0_31 = arith.constant 0 : index
    %c0_32 = arith.constant 0 : index
    %40 = vector.load %arg12[%c0_29, %c0_30, %c0_31, %c0_32] : memref<1x4x8x12xf32, #tpu.memory_space<vmem>>, vector<1x1x8x12xf32>
    %41 = vector.shape_cast %40 : vector<1x1x8x12xf32> to vector<8x12xf32>
    %42 = vector.shape_cast %39 : vector<8x12xf32> to vector<1x1x8x12xf32>
    tpu.vector_store %arg12[%c0_29, %c0_30, %c0_31, %c0_32], %42 {strides = array<i32>} : memref<1x4x8x12xf32, #tpu.memory_space<vmem>>, vector<1x1x8x12xf32>,
    %43 = arith.cmpf one, %39, %39 : vector<8x12xf32>
    %cst_33 = arith.constant 0.000000e+00 : f32
    %44 = vector.broadcast %cst_33 : f32 to vector<8x12xf32>
    %45 = arith.select %43, %44, %39 : vector<8x12xi1>, vector<8x12xf32>
    %46 = vector.extract_strided_slice %9 {offsets = [0, 0], sizes = [12, 8], strides = [1, 1]} : vector<12x32xf32> to vector<12x8xf32>
    %cst_34 = arith.constant dense<0.000000e+00> : vector<8x8xf32>
    %47 = tpu.matmul %45, %46, %cst_34 {dimension_numbers = #tpu.dot_dimension_numbers<[1], [0], [0], [1], [0, 0, 1, 1], [], []>} : vector<8x12xf32>, vector<12x8xf32>, vector<8x8xf32> -> vector<8x8xf32>
    %48 = vector.extract_strided_slice %10 {offsets = [0, 0], sizes = [8, 32], strides = [1, 1]} : vector<32x32xf32> to vector<8x32xf32>
    %cst_35 = arith.constant dense<0.000000e+00> : vector<8x32xf32>
    %49 = tpu.matmul %47, %48, %cst_35 {dimension_numbers = #tpu.dot_dimension_numbers<[1], [0], [0], [1], [0, 0, 1, 1], [], []>} : vector<8x8xf32>, vector<8x32xf32>, vector<8x32xf32> -> vector<8x32xf32>
    %50 = arith.addf %22, %49 : vector<8x32xf32>
    %51 = vector.extract_strided_slice %5 {offsets = [0, 8], sizes = [8, 8], strides = [1, 1]} : vector<8x32xf32> to vector<8x8xf32>
    %52 = vector.extract_strided_slice %7 {offsets = [0, 8], sizes = [12, 8], strides = [1, 1]} : vector<12x32xf32> to vector<12x8xf32>
    %53 = tpu.transpose %52, [1, 0] : vector<12x8xf32> -> vector<8x12xf32>
    %cst_36 = arith.constant dense<0.000000e+00> : vector<8x12xf32>
    %54 = tpu.matmul %51, %53, %cst_36 {dimension_numbers = #tpu.dot_dimension_numbers<[1], [0], [0], [1], [0, 0, 1, 1], [], []>} : vector<8x8xf32>, vector<8x12xf32>, vector<8x12xf32> -> vector<8x12xf32>
    %cst_37 = arith.constant 0.353553385 : f32
    %55 = vector.broadcast %cst_37 : f32 to vector<8x12xf32>
    %56 = arith.mulf %54, %55 : vector<8x12xf32>
    %cst_38 = arith.constant 0xFF800000 : f32
    %57 = vector.broadcast %cst_38 : f32 to vector<8x12xf32>
    %58 = arith.select %21, %57, %56 : vector<8x12xi1>, vector<8x12xf32>
    %cst_39 = arith.constant dense<0xFF800000> : vector<8xf32>
    %59 = vector.multi_reduction <maximumf>, %58, %cst_39 [1] : vector<8x12xf32> to vector<8xf32>
    %60 = vector.shape_cast %59 : vector<8xf32> to vector<8x1xf32>
    %61 = vector.broadcast %60 : vector<8x1xf32> to vector<8x12xf32>
    %62 = arith.subf %58, %61 : vector<8x12xf32>
    %63 = math.exp %62 : vector<8x12xf32>
    %cst_40 = arith.constant dense<0.000000e+00> : vector<8xf32>
    %64 = vector.multi_reduction <add>, %63, %cst_40 [1] : vector<8x12xf32> to vector<8xf32>
    %65 = vector.shape_cast %64 : vector<8xf32> to vector<8x1xf32>
    %66 = vector.broadcast %65 : vector<8x1xf32> to vector<8x12xf32>
    %67 = arith.divf %63, %66 : vector<8x12xf32>
    %c0_41 = arith.constant 0 : index
    %c1 = arith.constant 1 : index
    %c0_42 = arith.constant 0 : index
    %c0_43 = arith.constant 0 : index
    %68 = vector.load %arg12[%c0_41, %c1, %c0_42, %c0_43] : memref<1x4x8x12xf32, #tpu.memory_space<vmem>>, vector<1x1x8x12xf32>
    %69 = vector.shape_cast %68 : vector<1x1x8x12xf32> to vector<8x12xf32>
    %70 = vector.shape_cast %67 : vector<8x12xf32> to vector<1x1x8x12xf32>
    tpu.vector_store %arg12[%c0_41, %c1, %c0_42, %c0_43], %70 {strides = array<i32>} : memref<1x4x8x12xf32, #tpu.memory_space<vmem>>, vector<1x1x8x12xf32>,
    %71 = arith.cmpf one, %67, %67 : vector<8x12xf32>
    %cst_44 = arith.constant 0.000000e+00 : f32
    %72 = vector.broadcast %cst_44 : f32 to vector<8x12xf32>
    %73 = arith.select %71, %72, %67 : vector<8x12xi1>, vector<8x12xf32>
    %74 = vector.extract_strided_slice %9 {offsets = [0, 8], sizes = [12, 8], strides = [1, 1]} : vector<12x32xf32> to vector<12x8xf32>
    %cst_45 = arith.constant dense<0.000000e+00> : vector<8x8xf32>
    %75 = tpu.matmul %73, %74, %cst_45 {dimension_numbers = #tpu.dot_dimension_numbers<[1], [0], [0], [1], [0, 0, 1, 1], [], []>} : vector<8x12xf32>, vector<12x8xf32>, vector<8x8xf32> -> vector<8x8xf32>
    %76 = vector.extract_strided_slice %10 {offsets = [8, 0], sizes = [8, 32], strides = [1, 1]} : vector<32x32xf32> to vector<8x32xf32>
    %cst_46 = arith.constant dense<0.000000e+00> : vector<8x32xf32>
    %77 = tpu.matmul %75, %76, %cst_46 {dimension_numbers = #tpu.dot_dimension_numbers<[1], [0], [0], [1], [0, 0, 1, 1], [], []>} : vector<8x8xf32>, vector<8x32xf32>, vector<8x32xf32> -> vector<8x32xf32>
    %78 = arith.addf %50, %77 : vector<8x32xf32>
    %79 = vector.extract_strided_slice %5 {offsets = [0, 16], sizes = [8, 8], strides = [1, 1]} : vector<8x32xf32> to vector<8x8xf32>
    %80 = vector.extract_strided_slice %7 {offsets = [0, 16], sizes = [12, 8], strides = [1, 1]} : vector<12x32xf32> to vector<12x8xf32>
    %81 = tpu.transpose %80, [1, 0] : vector<12x8xf32> -> vector<8x12xf32>
    %cst_47 = arith.constant dense<0.000000e+00> : vector<8x12xf32>
    %82 = tpu.matmul %79, %81, %cst_47 {dimension_numbers = #tpu.dot_dimension_numbers<[1], [0], [0], [1], [0, 0, 1, 1], [], []>} : vector<8x8xf32>, vector<8x12xf32>, vector<8x12xf32> -> vector<8x12xf32>
    %cst_48 = arith.constant 0.353553385 : f32
    %83 = vector.broadcast %cst_48 : f32 to vector<8x12xf32>
    %84 = arith.mulf %82, %83 : vector<8x12xf32>
    %cst_49 = arith.constant 0xFF800000 : f32
    %85 = vector.broadcast %cst_49 : f32 to vector<8x12xf32>
    %86 = arith.select %21, %85, %84 : vector<8x12xi1>, vector<8x12xf32>
    %cst_50 = arith.constant dense<0xFF800000> : vector<8xf32>
    %87 = vector.multi_reduction <maximumf>, %86, %cst_50 [1] : vector<8x12xf32> to vector<8xf32>
    %88 = vector.shape_cast %87 : vector<8xf32> to vector<8x1xf32>
    %89 = vector.broadcast %88 : vector<8x1xf32> to vector<8x12xf32>
    %90 = arith.subf %86, %89 : vector<8x12xf32>
    %91 = math.exp %90 : vector<8x12xf32>
    %cst_51 = arith.constant dense<0.000000e+00> : vector<8xf32>
    %92 = vector.multi_reduction <add>, %91, %cst_51 [1] : vector<8x12xf32> to vector<8xf32>
    %93 = vector.shape_cast %92 : vector<8xf32> to vector<8x1xf32>
    %94 = vector.broadcast %93 : vector<8x1xf32> to vector<8x12xf32>
    %95 = arith.divf %91, %94 : vector<8x12xf32>
    %c0_52 = arith.constant 0 : index
    %c2 = arith.constant 2 : index
    %c0_53 = arith.constant 0 : index
    %c0_54 = arith.constant 0 : index
    %96 = vector.load %arg12[%c0_52, %c2, %c0_53, %c0_54] : memref<1x4x8x12xf32, #tpu.memory_space<vmem>>, vector<1x1x8x12xf32>
    %97 = vector.shape_cast %96 : vector<1x1x8x12xf32> to vector<8x12xf32>
    %98 = vector.shape_cast %95 : vector<8x12xf32> to vector<1x1x8x12xf32>
    tpu.vector_store %arg12[%c0_52, %c2, %c0_53, %c0_54], %98 {strides = array<i32>} : memref<1x4x8x12xf32, #tpu.memory_space<vmem>>, vector<1x1x8x12xf32>,
    %99 = arith.cmpf one, %95, %95 : vector<8x12xf32>
    %cst_55 = arith.constant 0.000000e+00 : f32
    %100 = vector.broadcast %cst_55 : f32 to vector<8x12xf32>
    %101 = arith.select %99, %100, %95 : vector<8x12xi1>, vector<8x12xf32>
    %102 = vector.extract_strided_slice %9 {offsets = [0, 16], sizes = [12, 8], strides = [1, 1]} : vector<12x32xf32> to vector<12x8xf32>
    %cst_56 = arith.constant dense<0.000000e+00> : vector<8x8xf32>
    %103 = tpu.matmul %101, %102, %cst_56 {dimension_numbers = #tpu.dot_dimension_numbers<[1], [0], [0], [1], [0, 0, 1, 1], [], []>} : vector<8x12xf32>, vector<12x8xf32>, vector<8x8xf32> -> vector<8x8xf32>
    %104 = vector.extract_strided_slice %10 {offsets = [16, 0], sizes = [8, 32], strides = [1, 1]} : vector<32x32xf32> to vector<8x32xf32>
    %cst_57 = arith.constant dense<0.000000e+00> : vector<8x32xf32>
    %105 = tpu.matmul %103, %104, %cst_57 {dimension_numbers = #tpu.dot_dimension_numbers<[1], [0], [0], [1], [0, 0, 1, 1], [], []>} : vector<8x8xf32>, vector<8x32xf32>, vector<8x32xf32> -> vector<8x32xf32>
    %106 = arith.addf %78, %105 : vector<8x32xf32>
    %107 = vector.extract_strided_slice %5 {offsets = [0, 24], sizes = [8, 8], strides = [1, 1]} : vector<8x32xf32> to vector<8x8xf32>
    %108 = vector.extract_strided_slice %7 {offsets = [0, 24], sizes = [12, 8], strides = [1, 1]} : vector<12x32xf32> to vector<12x8xf32>
    %109 = tpu.transpose %108, [1, 0] : vector<12x8xf32> -> vector<8x12xf32>
    %cst_58 = arith.constant dense<0.000000e+00> : vector<8x12xf32>
    %110 = tpu.matmul %107, %109, %cst_58 {dimension_numbers = #tpu.dot_dimension_numbers<[1], [0], [0], [1], [0, 0, 1, 1], [], []>} : vector<8x8xf32>, vector<8x12xf32>, vector<8x12xf32> -> vector<8x12xf32>
    %cst_59 = arith.constant 0.353553385 : f32
    %111 = vector.broadcast %cst_59 : f32 to vector<8x12xf32>
    %112 = arith.mulf %110, %111 : vector<8x12xf32>
    %cst_60 = arith.constant 0xFF800000 : f32
    %113 = vector.broadcast %cst_60 : f32 to vector<8x12xf32>
    %114 = arith.select %21, %113, %112 : vector<8x12xi1>, vector<8x12xf32>
    %cst_61 = arith.constant dense<0xFF800000> : vector<8xf32>
    %115 = vector.multi_reduction <maximumf>, %114, %cst_61 [1] : vector<8x12xf32> to vector<8xf32>
    %116 = vector.shape_cast %115 : vector<8xf32> to vector<8x1xf32>
    %117 = vector.broadcast %116 : vector<8x1xf32> to vector<8x12xf32>
    %118 = arith.subf %114, %117 : vector<8x12xf32>
    %119 = math.exp %118 : vector<8x12xf32>
    %cst_62 = arith.constant dense<0.000000e+00> : vector<8xf32>
    %120 = vector.multi_reduction <add>, %119, %cst_62 [1] : vector<8x12xf32> to vector<8xf32>
    %121 = vector.shape_cast %120 : vector<8xf32> to vector<8x1xf32>
    %122 = vector.broadcast %121 : vector<8x1xf32> to vector<8x12xf32>
    %123 = arith.divf %119, %122 : vector<8x12xf32>
    %c0_63 = arith.constant 0 : index
    %c3 = arith.constant 3 : index
    %c0_64 = arith.constant 0 : index
    %c0_65 = arith.constant 0 : index
    %124 = vector.load %arg12[%c0_63, %c3, %c0_64, %c0_65] : memref<1x4x8x12xf32, #tpu.memory_space<vmem>>, vector<1x1x8x12xf32>
    %125 = vector.shape_cast %124 : vector<1x1x8x12xf32> to vector<8x12xf32>
    %126 = vector.shape_cast %123 : vector<8x12xf32> to vector<1x1x8x12xf32>
    tpu.vector_store %arg12[%c0_63, %c3, %c0_64, %c0_65], %126 {strides = array<i32>} : memref<1x4x8x12xf32, #tpu.memory_space<vmem>>, vector<1x1x8x12xf32>,
    %127 = arith.cmpf one, %123, %123 : vector<8x12xf32>
    %cst_66 = arith.constant 0.000000e+00 : f32
    %128 = vector.broadcast %cst_66 : f32 to vector<8x12xf32>
    %129 = arith.select %127, %128, %123 : vector<8x12xi1>, vector<8x12xf32>
    %130 = vector.extract_strided_slice %9 {offsets = [0, 24], sizes = [12, 8], strides = [1, 1]} : vector<12x32xf32> to vector<12x8xf32>
    %cst_67 = arith.constant dense<0.000000e+00> : vector<8x8xf32>
    %131 = tpu.matmul %129, %130, %cst_67 {dimension_numbers = #tpu.dot_dimension_numbers<[1], [0], [0], [1], [0, 0, 1, 1], [], []>} : vector<8x12xf32>, vector<12x8xf32>, vector<8x8xf32> -> vector<8x8xf32>
    %132 = vector.extract_strided_slice %10 {offsets = [24, 0], sizes = [8, 32], strides = [1, 1]} : vector<32x32xf32> to vector<8x32xf32>
    %cst_68 = arith.constant dense<0.000000e+00> : vector<8x32xf32>
    %133 = tpu.matmul %131, %132, %cst_68 {dimension_numbers = #tpu.dot_dimension_numbers<[1], [0], [0], [1], [0, 0, 1, 1], [], []>} : vector<8x8xf32>, vector<8x32xf32>, vector<8x32xf32> -> vector<8x32xf32>
    %134 = arith.addf %106, %133 : vector<8x32xf32>
    %135 = arith.addf %134, %1 : vector<8x32xf32>
    %cst_69 = arith.constant dense<0.000000e+00> : vector<8xf32>
    %136 = vector.multi_reduction <add>, %135, %cst_69 [1] : vector<8x32xf32> to vector<8xf32>
    %137 = vector.shape_cast %136 : vector<8xf32> to vector<8x1xf32>
    %cst_70 = arith.constant 3.200000e+01 : f32
    %138 = vector.broadcast %cst_70 : f32 to vector<8x1xf32>
    %139 = arith.divf %137, %138 : vector<8x1xf32>
    %140 = vector.broadcast %139 : vector<8x1xf32> to vector<8x32xf32>
    %141 = arith.subf %135, %140 : vector<8x32xf32>
    %142 = arith.mulf %141, %141 : vector<8x32xf32>
    %cst_71 = arith.constant dense<0.000000e+00> : vector<8xf32>
    %143 = vector.multi_reduction <add>, %142, %cst_71 [1] : vector<8x32xf32> to vector<8xf32>
    %144 = vector.shape_cast %143 : vector<8xf32> to vector<8x1xf32>
    %cst_72 = arith.constant 3.200000e+01 : f32
    %145 = vector.broadcast %cst_72 : f32 to vector<8x1xf32>
    %146 = arith.divf %144, %145 : vector<8x1xf32>
    %cst_73 = arith.constant 9.99999974E-6 : f32
    %147 = vector.broadcast %cst_73 : f32 to vector<8x1xf32>
    %148 = arith.addf %146, %147 : vector<8x1xf32>
    %149 = math.rsqrt %148 : vector<8x1xf32>
    %150 = vector.broadcast %149 : vector<8x1xf32> to vector<8x32xf32>
    %151 = arith.mulf %141, %150 : vector<8x32xf32>
    %c0_74 = arith.constant 0 : index
    %c0_75 = arith.constant 0 : index
    %152 = vector.load %arg9[%c0_74, %c0_75] : memref<1x32xf32, #tpu.memory_space<vmem>>, vector<1x32xf32>
    %153 = vector.broadcast %152 : vector<1x32xf32> to vector<8x32xf32>
    %154 = arith.mulf %151, %153 : vector<8x32xf32>
    %c0_76 = arith.constant 0 : index
    %c0_77 = arith.constant 0 : index
    %155 = vector.load %arg10[%c0_76, %c0_77] : memref<1x32xf32, #tpu.memory_space<vmem>>, vector<1x32xf32>
    %156 = vector.broadcast %155 : vector<1x32xf32> to vector<8x32xf32>
    %157 = arith.addf %154, %156 : vector<8x32xf32>
    %c0_78 = arith.constant 0 : index
    %c0_79 = arith.constant 0 : index
    %c0_80 = arith.constant 0 : index
    %158 = vector.load %arg11[%c0_78, %c0_79, %c0_80] : memref<1x8x32xf32, #tpu.memory_space<vmem>>, vector<1x8x32xf32>
    %159 = vector.shape_cast %158 : vector<1x8x32xf32> to vector<8x32xf32>
    %160 = vector.shape_cast %157 : vector<8x32xf32> to vector<1x8x32xf32>
    tpu.vector_store %arg11[%c0_78, %c0_79, %c0_80], %160 {strides = array<i32>} : memref<1x8x32xf32, #tpu.memory_space<vmem>>, vector<1x8x32xf32>,
    return
  }
  func.func @transform_0(%arg0: i32) -> (i32, i32, i32) {
    %c0_i32 = arith.constant 0 : i32
    %c0_i32_0 = arith.constant 0 : i32
    %c0_i32_1 = arith.constant 0 : i32
    return %arg0, %c0_i32, %c0_i32_0 : i32, i32, i32
  }
  func.func @transform_1(%arg0: i32) -> (i32, i32, i32) {
    %c0_i32 = arith.constant 0 : i32
    %c0_i32_0 = arith.constant 0 : i32
    %c0_i32_1 = arith.constant 0 : i32
    return %arg0, %c0_i32, %c0_i32_0 : i32, i32, i32
  }
  func.func @transform_2(%arg0: i32) -> (i32, i32, i32) {
    %c0_i32 = arith.constant 0 : i32
    %c0_i32_0 = arith.constant 0 : i32
    %c0_i32_1 = arith.constant 0 : i32
    return %arg0, %c0_i32, %c0_i32_0 : i32, i32, i32
  }
  func.func @transform_3(%arg0: i32) -> (i32, i32, i32) {
    %c0_i32 = arith.constant 0 : i32
    %c0_i32_0 = arith.constant 0 : i32
    %c0_i32_1 = arith.constant 0 : i32
    return %arg0, %c0_i32, %c0_i32_0 : i32, i32, i32
  }
  func.func @transform_4(%arg0: i32) -> (i32, i32) {
    %c0_i32 = arith.constant 0 : i32
    %c0_i32_0 = arith.constant 0 : i32
    %c0_i32_1 = arith.constant 0 : i32
    return %c0_i32, %c0_i32_0 : i32, i32
  }
  func.func @transform_5(%arg0: i32) -> (i32, i32) {
    %c0_i32 = arith.constant 0 : i32
    %c0_i32_0 = arith.constant 0 : i32
    %c0_i32_1 = arith.constant 0 : i32
    return %c0_i32, %c0_i32_0 : i32, i32
  }
  func.func @transform_6(%arg0: i32) -> (i32, i32) {
    %c0_i32 = arith.constant 0 : i32
    %c0_i32_0 = arith.constant 0 : i32
    %c0_i32_1 = arith.constant 0 : i32
    return %c0_i32, %c0_i32_0 : i32, i32
  }
  func.func @transform_7(%arg0: i32) -> (i32, i32) {
    %c0_i32 = arith.constant 0 : i32
    %c0_i32_0 = arith.constant 0 : i32
    %c0_i32_1 = arith.constant 0 : i32
    return %c0_i32, %c0_i32_0 : i32, i32
  }
  func.func @transform_8(%arg0: i32) -> (i32, i32) {
    %c0_i32 = arith.constant 0 : i32
    %c0_i32_0 = arith.constant 0 : i32
    %c0_i32_1 = arith.constant 0 : i32
    return %c0_i32, %c0_i32_0 : i32, i32
  }
  func.func @transform_9(%arg0: i32) -> (i32, i32) {
    %c0_i32 = arith.constant 0 : i32
    %c0_i32_0 = arith.constant 0 : i32
    %c0_i32_1 = arith.constant 0 : i32
    return %c0_i32, %c0_i32_0 : i32, i32
  }
  func.func @transform_10(%arg0: i32) -> (i32, i32, i32) {
    %c0_i32 = arith.constant 0 : i32
    %c0_i32_0 = arith.constant 0 : i32
    %c0_i32_1 = arith.constant 0 : i32
    return %arg0, %c0_i32, %c0_i32_0 : i32, i32, i32
  }
  func.func @transform_11(%arg0: i32) -> (i32, i32, i32, i32) {
    %c0_i32 = arith.constant 0 : i32
    %c0_i32_0 = arith.constant 0 : i32
    %c0_i32_1 = arith.constant 0 : i32
    %c0_i32_2 = arith.constant 0 : i32
    return %arg0, %c0_i32, %c0_i32_0, %c0_i32_1 : i32, i32, i32, i32
  }
}

module attributes {stable_mosaic.version = 11 : i64} {
  func.func @_ffn_ln_kernel(%arg0: i32, %arg1: memref<1x8x32xf32, #tpu.memory_space<vmem>>, %arg2: memref<32x64xf32, #tpu.memory_space<vmem>>, %arg3: memref<1x64xf32, #tpu.memory_space<vmem>>, %arg4: memref<64x32xf32, #tpu.memory_space<vmem>>, %arg5: memref<1x32xf32, #tpu.memory_space<vmem>>, %arg6: memref<1x32xf32, #tpu.memory_space<vmem>>, %arg7: memref<1x32xf32, #tpu.memory_space<vmem>>, %arg8: memref<1x8x32xf32, #tpu.memory_space<vmem>>) attributes {dimension_semantics = [#tpu.dimension_semantics<parallel>], iteration_bounds = array<i64: 2>, scalar_prefetch = 0 : i64, scratch_operands = 0 : i64, tpu.core_type = #tpu.core_type<tc>, window_params = [{transform_indices = @transform_0, window_bounds = array<i64: 1, 8, 32>}, {pipeline_mode = #tpu.pipeline_mode<synchronous>, transform_indices = @transform_1, window_bounds = array<i64: 32, 64>}, {pipeline_mode = #tpu.pipeline_mode<synchronous>, transform_indices = @transform_2, window_bounds = array<i64: 1, 64>}, {pipeline_mode = #tpu.pipeline_mode<synchronous>, transform_indices = @transform_3, window_bounds = array<i64: 64, 32>}, {pipeline_mode = #tpu.pipeline_mode<synchronous>, transform_indices = @transform_4, window_bounds = array<i64: 1, 32>}, {pipeline_mode = #tpu.pipeline_mode<synchronous>, transform_indices = @transform_5, window_bounds = array<i64: 1, 32>}, {pipeline_mode = #tpu.pipeline_mode<synchronous>, transform_indices = @transform_6, window_bounds = array<i64: 1, 32>}, {transform_indices = @transform_7, window_bounds = array<i64: 1, 8, 32>}]} {
    %c0 = arith.constant 0 : index
    %c0_0 = arith.constant 0 : index
    %c0_1 = arith.constant 0 : index
    %0 = vector.load %arg1[%c0, %c0_0, %c0_1] : memref<1x8x32xf32, #tpu.memory_space<vmem>>, vector<1x8x32xf32>
    %1 = vector.shape_cast %0 : vector<1x8x32xf32> to vector<8x32xf32>
    %c0_2 = arith.constant 0 : index
    %c0_3 = arith.constant 0 : index
    %2 = vector.load %arg2[%c0_2, %c0_3] : memref<32x64xf32, #tpu.memory_space<vmem>>, vector<32x64xf32>
    %cst = arith.constant dense<0.000000e+00> : vector<8x64xf32>
    %3 = tpu.matmul %1, %2, %cst {dimension_numbers = #tpu.dot_dimension_numbers<[1], [0], [0], [1], [0, 0, 1, 1], [], []>} : vector<8x32xf32>, vector<32x64xf32>, vector<8x64xf32> -> vector<8x64xf32>
    %c0_4 = arith.constant 0 : index
    %c0_5 = arith.constant 0 : index
    %4 = vector.load %arg3[%c0_4, %c0_5] : memref<1x64xf32, #tpu.memory_space<vmem>>, vector<1x64xf32>
    %5 = vector.broadcast %4 : vector<1x64xf32> to vector<8x64xf32>
    %6 = arith.addf %3, %5 : vector<8x64xf32>
    %cst_6 = arith.constant 0.000000e+00 : f32
    %7 = vector.broadcast %cst_6 : f32 to vector<8x64xf32>
    %8 = arith.maximumf %6, %7 : vector<8x64xf32>
    %c0_7 = arith.constant 0 : index
    %c0_8 = arith.constant 0 : index
    %9 = vector.load %arg4[%c0_7, %c0_8] : memref<64x32xf32, #tpu.memory_space<vmem>>, vector<64x32xf32>
    %cst_9 = arith.constant dense<0.000000e+00> : vector<8x32xf32>
    %10 = tpu.matmul %8, %9, %cst_9 {dimension_numbers = #tpu.dot_dimension_numbers<[1], [0], [0], [1], [0, 0, 1, 1], [], []>} : vector<8x64xf32>, vector<64x32xf32>, vector<8x32xf32> -> vector<8x32xf32>
    %c0_10 = arith.constant 0 : index
    %c0_11 = arith.constant 0 : index
    %11 = vector.load %arg5[%c0_10, %c0_11] : memref<1x32xf32, #tpu.memory_space<vmem>>, vector<1x32xf32>
    %12 = vector.broadcast %11 : vector<1x32xf32> to vector<8x32xf32>
    %13 = arith.addf %10, %12 : vector<8x32xf32>
    %14 = arith.addf %13, %1 : vector<8x32xf32>
    %cst_12 = arith.constant dense<0.000000e+00> : vector<8xf32>
    %15 = vector.multi_reduction <add>, %14, %cst_12 [1] : vector<8x32xf32> to vector<8xf32>
    %16 = vector.shape_cast %15 : vector<8xf32> to vector<8x1xf32>
    %cst_13 = arith.constant 3.200000e+01 : f32
    %17 = vector.broadcast %cst_13 : f32 to vector<8x1xf32>
    %18 = arith.divf %16, %17 : vector<8x1xf32>
    %19 = vector.broadcast %18 : vector<8x1xf32> to vector<8x32xf32>
    %20 = arith.subf %14, %19 : vector<8x32xf32>
    %21 = arith.mulf %20, %20 : vector<8x32xf32>
    %cst_14 = arith.constant dense<0.000000e+00> : vector<8xf32>
    %22 = vector.multi_reduction <add>, %21, %cst_14 [1] : vector<8x32xf32> to vector<8xf32>
    %23 = vector.shape_cast %22 : vector<8xf32> to vector<8x1xf32>
    %cst_15 = arith.constant 3.200000e+01 : f32
    %24 = vector.broadcast %cst_15 : f32 to vector<8x1xf32>
    %25 = arith.divf %23, %24 : vector<8x1xf32>
    %cst_16 = arith.constant 9.99999974E-6 : f32
    %26 = vector.broadcast %cst_16 : f32 to vector<8x1xf32>
    %27 = arith.addf %25, %26 : vector<8x1xf32>
    %28 = math.rsqrt %27 : vector<8x1xf32>
    %29 = vector.broadcast %28 : vector<8x1xf32> to vector<8x32xf32>
    %30 = arith.mulf %20, %29 : vector<8x32xf32>
    %c0_17 = arith.constant 0 : index
    %c0_18 = arith.constant 0 : index
    %31 = vector.load %arg6[%c0_17, %c0_18] : memref<1x32xf32, #tpu.memory_space<vmem>>, vector<1x32xf32>
    %32 = vector.broadcast %31 : vector<1x32xf32> to vector<8x32xf32>
    %33 = arith.mulf %30, %32 : vector<8x32xf32>
    %c0_19 = arith.constant 0 : index
    %c0_20 = arith.constant 0 : index
    %34 = vector.load %arg7[%c0_19, %c0_20] : memref<1x32xf32, #tpu.memory_space<vmem>>, vector<1x32xf32>
    %35 = vector.broadcast %34 : vector<1x32xf32> to vector<8x32xf32>
    %36 = arith.addf %33, %35 : vector<8x32xf32>
    %c0_21 = arith.constant 0 : index
    %c0_22 = arith.constant 0 : index
    %c0_23 = arith.constant 0 : index
    %37 = vector.load %arg8[%c0_21, %c0_22, %c0_23] : memref<1x8x32xf32, #tpu.memory_space<vmem>>, vector<1x8x32xf32>
    %38 = vector.shape_cast %37 : vector<1x8x32xf32> to vector<8x32xf32>
    %39 = vector.shape_cast %36 : vector<8x32xf32> to vector<1x8x32xf32>
    tpu.vector_store %arg8[%c0_21, %c0_22, %c0_23], %39 {strides = array<i32>} : memref<1x8x32xf32, #tpu.memory_space<vmem>>, vector<1x8x32xf32>,
    return
  }
  func.func @transform_0(%arg0: i32) -> (i32, i32, i32) {
    %c0_i32 = arith.constant 0 : i32
    %c0_i32_0 = arith.constant 0 : i32
    %c0_i32_1 = arith.constant 0 : i32
    return %arg0, %c0_i32, %c0_i32_0 : i32, i32, i32
  }
  func.func @transform_1(%arg0: i32) -> (i32, i32) {
    %c0_i32 = arith.constant 0 : i32
    %c0_i32_0 = arith.constant 0 : i32
    %c0_i32_1 = arith.constant 0 : i32
    return %c0_i32, %c0_i32_0 : i32, i32
  }
  func.func @transform_2(%arg0: i32) -> (i32, i32) {
    %c0_i32 = arith.constant 0 : i32
    %c0_i32_0 = arith.constant 0 : i32
    %c0_i32_1 = arith.constant 0 : i32
    return %c0_i32, %c0_i32_0 : i32, i32
  }
  func.func @transform_3(%arg0: i32) -> (i32, i32) {
    %c0_i32 = arith.constant 0 : i32
    %c0_i32_0 = arith.constant 0 : i32
    %c0_i32_1 = arith.constant 0 : i32
    return %c0_i32, %c0_i32_0 : i32, i32
  }
  func.func @transform_4(%arg0: i32) -> (i32, i32) {
    %c0_i32 = arith.constant 0 : i32
    %c0_i32_0 = arith.constant 0 : i32
    %c0_i32_1 = arith.constant 0 : i32
    return %c0_i32, %c0_i32_0 : i32, i32
  }
  func.func @transform_5(%arg0: i32) -> (i32, i32) {
    %c0_i32 = arith.constant 0 : i32
    %c0_i32_0 = arith.constant 0 : i32
    %c0_i32_1 = arith.constant 0 : i32
    return %c0_i32, %c0_i32_0 : i32, i32
  }
  func.func @transform_6(%arg0: i32) -> (i32, i32) {
    %c0_i32 = arith.constant 0 : i32
    %c0_i32_0 = arith.constant 0 : i32
    %c0_i32_1 = arith.constant 0 : i32
    return %c0_i32, %c0_i32_0 : i32, i32
  }
  func.func @transform_7(%arg0: i32) -> (i32, i32, i32) {
    %c0_i32 = arith.constant 0 : i32
    %c0_i32_0 = arith.constant 0 : i32
    %c0_i32_1 = arith.constant 0 : i32
    return %arg0, %c0_i32, %c0_i32_0 : i32, i32, i32
  }
}

</mosaic_0001>

<bundles_post_ra>
// kernel: decoder_layer.5
= control target key start
LH: loop header
LB: loop body
LE: loop exit
PB: predicated region body
PF: predicated region fallthrough
CT: control target
= control target key end

     0   :  { %12 = vsyncpa [#allocation3], 0  ;;  %s904_s0 = inlined_call_operand.vmem [shape: f32[2,8,32], index: 0, kind: input, shape index: {}]   ;;  %s905_s1 = inlined_call_operand.vmem [shape: f32[32,64], index: 1, kind: input, shape index: {}]   ;;  %s906_s2 = inlined_call_operand.vmem [shape: f32[1,64], index: 2, kind: input, shape index: {}]   ;;  %s907_s3 = inlined_call_operand.vmem [shape: f32[64,32], index: 3, kind: input, shape index: {}]   ;;  %s908_s4 = inlined_call_operand.vmem [shape: f32[1,32], index: 4, kind: input, shape index: {}]   ;;  %s909_s5 = inlined_call_operand.vmem [shape: f32[1,32], index: 5, kind: input, shape index: {}]   ;;  %s910_s6 = inlined_call_operand.vmem [shape: f32[1,32], index: 6, kind: input, shape index: {}]   ;;  %s911_s7 = inlined_call_operand.hbm [shape: f32[2,8,32], index: 7, kind: output, shape index: {}]  }
   0x1   :  { %14 = vsyncpa [#allocation3 + $0x1], 0  ;;  %s763_s24 = smov 0   ;;  %s765_s25 = smov 0  }
   0x2   :  { %s767_s26 = smov 0   ;;  %s769_s27 = smov 0  }
   0x3 LB: > { %s784_s28 = sadd.s32 4294967295, %s718_s27   ;;  %s555_s29 = sadd.s32 4294967294, %s718_s27   ;;  %s718_s27 = sphi %s769_s27, %s917_s27   ;;  %s714_s26 = sphi %s767_s26, %s916_s26   ;;  %s710_s25 = sphi %s765_s25, %s915_s25   ;;  %s706_s24 = sphi %s763_s24, %s914_s24  }
   0x4   : > { %s788_s30 = sadd.s32 1, %s718_s27   ;;  %s179_s8 = sadd.s32 1, %s714_s26 }
   0x5   : > { %s176_s9 = ssub.s32 %s718_s27, %s788_s30  ;;  %p189_p0 = scmp.ne.s32.totalorder %s714_s26, %s710_s25 }
   0x6   : > { %p177_p1 = scmp.eq.s32.totalorder %s176_s9, 0  ;;  %p190_p2 = scmp.eq.s32.totalorder %s784_s28, 1 }
   0x7   : > { %p195_p3 = scmp.ne.s32.totalorder %s710_s25, %s706_s24  ;;  %p196_p4 = scmp.eq.s32.totalorder %s555_s29, 1 }
   0x8   : > { %s799_s10 = scalar_select %p177_p1, %s714_s26, %s179_s8  }
   0x9   : > { %p801_p5 = por %p190_p2, %p189_p0  ;;  %p805_p6 = por %p196_p4, %p195_p3 }
   0xa   : > { %p558_p7 = scmp.ge.s32.totalorder %s718_s27, 1  ;;  %p239_p8 = scmp.lt.s32.totalorder %s718_s27, 3 }
   0xc   : > { %p240_p9 = pnand %p558_p7, %p239_p8 }
   0xd   : > { %p270_p10 = scmp.lt.s32.totalorder (!%p240_p9), %s784_s28, 1  ;;  %s267_s18 = sand.u32 (!%p240_p9), 1, %s710_s25  }
   0xe   : > { %243 = sbr.rel (%p240_p9) target bundleno = 743 (0x2e7), region = 48  ;;  %s483_s16 = scalar_lea.sflag (!%p240_p9), [#allocation3], %s267_s18 }
   0xf   : > { %s722_s20 = smov (!%p240_p9), [#allocation2]  }
  0x10   : > { %s662_s21 = sshll.u32 (!%p240_p9), %s722_s20, 4  ;;  %s663_s21 = int_to_ptr.vmem [resolvable:$false] %s662_s21 }
  0x13   : > { %v278_v0 = vld [vmem:[%s905_s1 + $0x18] sm:$0xff]  ;;  %v720_v1 = vmov 0.0   ;;  %v277_v2 = vld [vmem:[%s905_s1 + $0x10] sm:$0xff]  ;;  %vm721_vm0 = vmmov 0   ;;  %s271_s19 = scalar_select %p270_p10, %s784_s28, 1  ;;  %v276_v5 = vld [vmem:[%s905_s1 + $0x8] sm:$0xff] }
  0x14   : > { %585 = vmatprep.subr.mxu0 %v720_v1  ;;  %593 = vmatprep.mubr.msk.f32.mxu0 %vm721_vm0, %v720_v1  ;;  %v368_v3 = vld [vmem:[%s907_s3 + $0x38] sm:$0xff]  ;;  %v367_v4 = vld [vmem:[%s907_s3 + $0x30] sm:$0xff]  ;;  %v366_v6 = vld [vmem:[%s907_s3 + $0x28] sm:$0xff]  ;;  %vm286_vm1 = vcmask 261120   ;;  %vm376_vm2 = vcmask 523264  }
  0x15   : > { %586 = vmatpush3.msra.mxu0 %v278_v0  ;;  %596 = vmatprep.subr.mxu1 %v720_v1  ;;  %s560_s29 = sshll.u32 %s271_s19, 3  ;;  %v275_v7 = vld [vmem:[%s905_s1] sm:$0xff]  ;;  %v364_v10 = vld [vmem:[%s907_s3 + $0x18] sm:$0xff]  ;;  %v363_v11 = vld [vmem:[%s907_s3 + $0x10] sm:$0xff]  ;;  %s559_s19 = sshll.u32 %s267_s18, 3 }
  0x16   : > { %587 = vmatprep.subr.mxu0 %v720_v1  ;;  %597 = vmatpush3.msra.mxu1 %v368_v3  ;;  %s273_s17 = scalar_lea.vmem %s904_s0, %s560_s29  ;;  %v365_v9 = vld [vmem:[%s907_s3 + $0x20] sm:$0xff]  ;;  %v362_v12 = vld [vmem:[%s907_s3 + $0x8] sm:$0xff]  ;;  %s568_s29 = sshll.u32 %s784_s28, 7 }
  0x17   : > { %588 = vmatpush3.msra.mxu0 %v277_v2  ;;  %598 = vmatprep.subr.mxu1 %v720_v1  ;;  %v274_v8 = vld [vmem:[%s273_s17] sm:$0xff]  ;;  %s269_s8 = scalar_lea.vmem [#allocation2], %s559_s19  ;;  %s494_s15 = scalar_lea.hbm %s911_s7, %s568_s29 }
  0x18   : > { %589 = vmatprep.subr.mxu0 %v720_v1  ;;  %599 = vmatpush3.msra.mxu1 %v367_v4  ;;  %v361_v13 = vld [vmem:[%s907_s3] sm:$0xff]  ;;  %s496_s9 = sshll.u32 %s269_s8, 4  ;;  %s664_s28 = scalar_lea.vmem %s663_s21, 256  ;;  %s497_s9 = int_to_ptr.vmem [resolvable:$true] %s496_s9 }
  0x19   : > { %590 = vmatpush3.msra.mxu0 %v276_v5  ;;  %600 = vmatprep.subr.mxu1 %v720_v1  ;;  %v561_v14 = vld [vmem:[%s906_s2] ss:$0 sm:$0xff]  ;;  %s658_s17 = scalar_lea.vmem %s497_s9, 128  ;;  %p665_p0 = scmp.lt.s32.totalorder %s497_s9, %s663_s21 }
  0x1a   : > { %591 = vmatprep.subr.mxu0 %v720_v1  ;;  %601 = vmatpush3.msra.mxu1 %v366_v6  ;;  %v563_v19 = vld [vmem:[%s908_s4] ss:$0 sm:$0xff]  ;;  %p659_p11 = scmp.ne.s32.totalorder %s497_s9, %s658_s17  ;;  %p666_p1 = scmp.lt.s32.totalorder %s664_s28, %s658_s17 }
  0x1b   : > { %592 = vmatpush3.msra.mxu0 %v275_v7  ;;  %602 = vmatprep.subr.mxu1 %v720_v1  ;;  %v565_v34 = vld [vmem:[%s909_s5] ss:$0 sm:$0xff] }
  0x1c   : > { %594 = vmatmul.mubr.msk.f32.vlgmr.msra.gmra.mxu0 %vm286_vm1, %v274_v8  ;;  %603 = vmatpush3.msra.mxu1 %v365_v9  ;;  %v566_v36 = vld [vmem:[%s910_s6] ss:$0 sm:$0xff]  ;;  %p660_p12 = pnand %p659_p11, %p801_p5  ;;  %p667_p2 = por %p666_p1, %p665_p0 }
  0x1d   : > { %604 = vmatprep.subr.mxu1 %v720_v1  ;;  %612 = vmatprep.mubr.msk.f32.mxu1 %vm721_vm0, %v720_v1 }
  0x1e   : > { %605 = vmatpush3.msra.mxu1 %v364_v10  ;;  %p661_p13 = pneg %p660_p12 }
  0x1f   : > { %606 = vmatprep.subr.mxu1 %v720_v1 }
  0x20   : > { %607 = vmatpush3.msra.mxu1 %v363_v11  ;;  %p668_p3 = pnand %p667_p2, %p661_p13 }
  0x21   : > { %608 = vmatprep.subr.mxu1 %v720_v1 }
  0x22   : > { %609 = vmatpush3.msra.mxu1 %v362_v12 }
  0x23   : > { %610 = vmatprep.subr.mxu1 %v720_v1 }
  0x24   : > { %611 = vmatpush3.msra.mxu1 %v361_v13 }
  0xdc   : > { %v356_v15 = vpop.f32.mrf.mxu0 }
  0xdd   : > { %v357_v16 = vadd.f32 %v561_v14, %v356_v15 }
  0xde   : > { %v595_v17 = vpop.f32.mrf.mxu0 }
  0xdf   : > { %v360_v18 = vmax.f32 %v357_v16, 0.0 }
  0xe1   : > { %613 = vmatmul.mubr.msk.f32.vlgmr.msra.gmra.mxu1 %vm376_vm2, %v360_v18 }
 0x1a1   : > { %v446_v20 = vpop.f32.mrf.mxu1 }
 0x1a2   : > { %v447_v21 = vadd.f32 %v563_v19, %v446_v20 }
 0x1a3   : > { %v614_v22 = vpop.f32.mrf.mxu1 }
 0x1a4   : > { %v450_v23 = vadd.f32 %v447_v21, %v274_v8 }
 0x1a6   : > { %v451_v24 = vsel %vm286_vm1, %v450_v23, 0.0 }
 0x1a7   : > { %452 = vadd.xlane.f32.xlu0 %v451_v24 }
 0x230   : > { %v453_v25 = vpop.xlane.xlu0 %452 }
 0x231   : > { %v455_v26 = vmul.f32 0.03125, %v453_v25 }
 0x233   : > { %v456_v27 = vsub.f32 %v450_v23, %v455_v26 }
 0x235   : > { %v457_v28 = vmul.f32 %v456_v27, %v456_v27 }
 0x237   : > { %v458_v29 = vsel %vm286_vm1, %v457_v28, 0.0 }
 0x238   : > { %459 = vadd.xlane.f32.xlu0 %v458_v29 }
 0x2c1   : > { %v460_v30 = vpop.xlane.xlu0 %459 }
 0x2c2   : > { %v461_v31 = vmul.f32 0.03125, %v460_v30 }
 0x2c4   : > { %v462_v32 = vadd.f32 1e-05, %v461_v31 }
 0x2c6   : > { %656 = vrsqrt.f32 %v462_v32 }
 0x2d3   : > { %v657_v33 = vpop.eup %656 }
 0x2d4   : > { %v464_v35 = vmul.f32 %v657_v33, %v456_v27 }
 0x2d6   : > { %v472_v37 = vmul.f32 %v565_v34, %v464_v35 }
 0x2d8   : > { %v480_v38 = vadd.f32 %v566_v36, %v472_v37 }
 0x2da   : > { %481 = vst.msk [vmem:[%s269_s8] sm:$0xff] %vm286_vm1, %v480_v38 }
 0x2db   : > { %671 = shalt.err (!%p668_p3)
}
 0x2dc   : > { %s672_s19 = scalar_lea.hbm %s494_s15, 128  ;;  %s676_s23 = scalar_lea.hbm %s911_s7, 256 }
 0x2dd   : > { %p673_p4 = scmp.ne.s32.totalorder %s494_s15, %s672_s19  ;;  %p677_p9 = scmp.lt.s32.totalorder %s494_s15, %s911_s7 }
 0x2de   : > { %p678_p10 = scmp.lt.s32.totalorder %s676_s23, %s672_s19 }
 0x2df   : > { %p674_p7 = pnand %p673_p4, %p801_p5 }
 0x2e0   : > { %p679_p11 = por %p678_p10, %p677_p9 }
 0x2e1   : > { %p675_p8 = pneg %p674_p7 }
 0x2e3   : > { %p680_p12 = pnand %p679_p11, %p675_p8 }
 0x2e5   : > { %683 = shalt.err (!%p680_p12)
}
 0x2e6   : > { %615 = dma.vmem_to_hbm [thread:$0]  (%p801_p5), %s497_s9, 128, %s494_s15, %s483_s16  }
 0x2e7 PF: > { %p621_p13 = scmp.ge.s32.totalorder %s718_s27, 2  ;;  %s508_s13 = sand.u32 1, %s706_s24  }
 0x2e8   : > { %s509_s14 = scalar_lea.sflag [#allocation3], %s508_s13 }
 0x2e9   : > { %p618_p0 = pnand %p621_p13, %p805_p6 }
 0x2eb   : > { %p619_p1 = pneg %p618_p0 }
 0x2ed   : > { %701 = dma.done.wait (%p619_p1), %s509_s14, 128  }
 0x2ee   : > { %703 = vsyncadd (%p619_p1), %s509_s14, 4294967168  ;;  %p17_p2 = scmp.ge.s32.totalorder %s788_s30, 4   ;;  %s914_s24 = smov %s710_s25 }
 0x2ef   : > { %s915_s25 = smov %s714_s26  ;;  %s916_s26 = smov %s799_s10 }
 0x2f0   : > { %s917_s27 = smov %s788_s30  ;;  %19 = sbr.rel (!%p17_p2) target bundleno = 3 (0x3), region = 83 }
 0x2f5   :  { %514 = vsyncpa [#allocation3], 1 }
 0x2f6   :  { %516 = vsyncpa [#allocation3 + $0x1], 1 }

// kernel: decoder_layer.3
= control target key start
LH: loop header
LB: loop body
LE: loop exit
PB: predicated region body
PF: predicated region fallthrough
CT: control target
= control target key end

     0   :  { %17 = vsyncpa [#allocation3], 0  ;;  %s2751_s0 = inlined_call_operand.vmem [shape: f32[2,8,32], index: 0, kind: input, shape index: {}, may-alias: {0,1}]   ;;  %s2752_s1 = inlined_call_operand.vmem [shape: f32[2,8,32], index: 1, kind: input, shape index: {}, may-alias: {0,1}]   ;;  %s2753_s2 = inlined_call_operand.vmem [shape: f32[2,8,1], index: 2, kind: input, shape index: {}]   ;;  %s2754_s3 = inlined_call_operand.vmem [shape: f32[2,1,8], index: 3, kind: input, shape index: {}]   ;;  %s2755_s4 = inlined_call_operand.vmem [shape: f32[32,32], index: 4, kind: input, shape index: {}]   ;;  %s2756_s5 = inlined_call_operand.hbm [shape: f32[32,32], index: 5, kind: input, shape index: {}]   ;;  %s2757_s6 = inlined_call_operand.hbm [shape: f32[32,32], index: 6, kind: input, shape index: {}]   ;;  %s2758_s7 = inlined_call_operand.hbm [shape: f32[32,32], index: 7, kind: input, shape index: {}]   ;;  %s2759_s8 = inlined_call_operand.vmem [shape: f32[1,32], index: 8, kind: input, shape index: {}]   ;;  %s2760_s9 = inlined_call_operand.vmem [shape: f32[1,32], index: 9, kind: input, shape index: {}]   ;;  %s2761_s10 = inlined_call_operand.vmem [shape: f32[2,8,32], index: 10, kind: output, shape index: {0}]   ;;  %s2762_s11 = inlined_call_operand.hbm [shape: f32[2,4,8,8], index: 11, kind: output, shape index: {1}]  }
   0x1   :  { %18 = vsyncpa [#allocation6], 0 }
   0x2   :  { %19 = vsyncpa [#allocation4], 0 }
   0x3   :  { %21 = vsyncpa [#allocation4 + $0x1], 0  ;;  %s2418_s17 = smov 0   ;;  %s2420_s18 = smov 0  }
   0x4   :  { %s2422_s19 = smov 0   ;;  %s2424_s20 = smov 0  }
   0x5 LB: > { %2766 = sst [smem:[#allocation12_spill]] %s2338_s19  ;;  %s2439_s21 = sadd.s32 4294967295, %s2342_s20   ;;  %s2342_s20 = sphi %s2424_s20, %s2784_s20   ;;  %s2338_s19 = sphi %s2422_s19, %s2781_s19   ;;  %s2334_s18 = sphi %s2420_s18, %s2783_s18   ;;  %s2330_s17 = sphi %s2418_s17, %s2782_s17  }
   0x6   : > { %s1919_s22 = sadd.s32 4294967294, %s2342_s20   ;;  %s2443_s23 = sadd.s32 1, %s2342_s20  }
   0x7   : > { %s290_s24 = sadd.s32 1, %s2338_s19  ;;  %s287_s25 = ssub.s32 %s2342_s20, %s2443_s23 }
   0x8   : > { %p300_p0 = scmp.ne.s32.totalorder %s2338_s19, %s2334_s18  ;;  %p288_p1 = scmp.eq.s32.totalorder %s287_s25, 0 }
   0x9   : > { %p301_p2 = scmp.eq.s32.totalorder %s2439_s21, 1  ;;  %p306_p3 = scmp.ne.s32.totalorder %s2334_s18, %s2330_s17 }
   0xa   : > { %p307_p4 = scmp.eq.s32.totalorder %s1919_s22, 1  ;;  %p1920_p7 = scmp.ge.s32.totalorder %s2342_s20, 1 }
   0xb   : > { %s2454_s26 = scalar_select %p288_p1, %s2338_s19, %s290_s24  }
   0xc   : > { %p2456_p5 = por %p301_p2, %p300_p0  ;;  %p2460_p6 = por %p307_p4, %p306_p3 }
   0xd   : > { %2767 = sst [smem:[#allocation13_spill]] %s2454_s26  ;;  %p314_p8 = scmp.lt.s32.totalorder %s2342_s20, 3 }
   0xe   : > { %s2768_s27 = scalar_select %p2456_p5, 1, 0 }
   0xf   : > { %s2769_s28 = scalar_select %p2460_p6, 1, 0 }
  0x10   : > { %p2763_p9 = scmp.eq.s32.totalorder %s2439_s21, 0  ;;  %p2467_p10 = pnand %p1920_p7, %p314_p8 }
  0x11   : > { %s2344_s30 = smov [#allocation5]   ;;  %s2345_s14 = smov [#allocation2]  }
  0x12   : > { %p2110_p11 = pneg %p2467_p10  ;;  %s342_s12 = sshll.u32 %s2344_s30, 4  ;;  %s343_s12 = int_to_ptr.vmem [resolvable:$true] %s342_s12 }
  0x13   : > { %s329_s15 = sshll.u32 %s2345_s14, 4  ;;  %s2346_s16 = smov [#allocation7]   ;;  %s330_s15 = int_to_ptr.vmem [resolvable:$true] %s329_s15 }
  0x14   : > { %p2475_p12 = pnand %p2763_p9, %p2110_p11  ;;  %s355_s22 = sshll.u32 %s2346_s16, 4  ;;  %s356_s22 = int_to_ptr.vmem [resolvable:$true] %s355_s22 }
  0x15   : > { %s2207_s24 = scalar_lea.vmem %s343_s12, 512  ;;  %p2215_p3 = scmp.lt.s32.totalorder %s343_s12, %s343_s12 }
  0x16   : > { %p2198_p13 = pneg %p2475_p12  ;;  %p2208_p0 = scmp.ne.s32.totalorder %s343_s12, %s2207_s24 }
  0x17   : > { %p2216_p4 = scmp.lt.s32.totalorder %s2207_s24, %s2207_s24 }
  0x18   : > { %p2210_p1 = pnand %p2208_p0, %p2198_p13 }
  0x19   : > { %p2217_p7 = por %p2216_p4, %p2215_p3 }
  0x1a   : > { %p2211_p2 = pneg %p2210_p1 }
  0x1c   : > { %p2218_p8 = pnand %p2217_p7, %p2211_p2 }
  0x1e   : > { %2221 = shalt.err (!%p2218_p8)
}
  0x1f   : > { %s2347_s25 = smov 128   ;;  %s2348_s30 = smov 8  }
  0x20   : > { %2116 = dma.hbm_to_vmem [thread:$0]  (!%p2475_p12), %s2757_s6, 512, %s343_s12, [#allocation6], %s2347_s25, %s2347_s25, %s2348_s30  }
  0x21   : > { %s2233_s26 = scalar_lea.vmem %s330_s15, 512  ;;  %p2241_p9 = scmp.lt.s32.totalorder %s330_s15, %s330_s15 }
  0x22   : > { %p2234_p11 = scmp.ne.s32.totalorder %s330_s15, %s2233_s26  ;;  %p2242_p6 = scmp.lt.s32.totalorder %s2233_s26, %s2233_s26 }
  0x24   : > { %p2236_p0 = pnand %p2234_p11, %p2198_p13  ;;  %p2243_p3 = por %p2242_p6, %p2241_p9 }
  0x26   : > { %p2237_p1 = pneg %p2236_p0 }
  0x28   : > { %p2244_p2 = pnand %p2243_p3, %p2237_p1 }
  0x2a   : > { %2247 = shalt.err (!%p2244_p2)
}
  0x2b   : > { %2113 = dma.hbm_to_vmem [thread:$0]  (!%p2475_p12), %s2756_s5, 512, %s330_s15, [#allocation3], %s2347_s25, %s2347_s25, %s2348_s30  }
  0x2c   : > { %s2259_s12 = scalar_lea.vmem %s356_s22, 512  ;;  %p2267_p11 = scmp.lt.s32.totalorder %s356_s22, %s356_s22 }
  0x2d   : > { %p2260_p4 = scmp.ne.s32.totalorder %s356_s22, %s2259_s12  ;;  %p2268_p0 = scmp.lt.s32.totalorder %s2259_s12, %s2259_s12 }
  0x2f   : > { %p2262_p7 = pnand %p2260_p4, %p2198_p13  ;;  %p2269_p5 = por %p2268_p0, %p2267_p11 }
  0x31   : > { %p2263_p8 = pneg %p2262_p7 }
  0x33   : > { %p2270_p6 = pnand %p2269_p5, %p2263_p8 }
  0x35   : > { %2273 = shalt.err (!%p2270_p6)
}
  0x36   : > { %2119 = dma.hbm_to_vmem [thread:$0]  (!%p2475_p12), %s2758_s7, 512, %s356_s22, [#allocation6], %s2347_s25, %s2347_s25, %s2348_s30  }
  0x37   : > { %404 = sbr.rel (%p2467_p10) target bundleno = 2816 (0xb00), region = 60  ;;  %p2772_p9 = scmp.eq.s32.totalorder (!%p2467_p10), %s2439_s21, 0 }
  0x3c   : > { %2317 = dma.done.wait (%p2772_p9), [#allocation3], 512   ;;  %p2773_p13 = pmov %p2772_p9 }
  0x3d   : > { %p2774_p1 = pmov %p2772_p9 }
  0x3e   : > { %2319 = vsyncadd (%p2773_p13), [#allocation3], 4294966784 }
  0x3f   : > { %2321 = dma.done.wait (%p2774_p1), [#allocation6], 1024   ;;  %p2775_p5 = pmov %p2774_p1 }
  0x40   : > { %p466_p3 = scmp.lt.s32.totalorder %s2439_s21, 1  ;;  %v2349_v0 = vmov 0.0   ;;  %vm2350_vm0 = vmmov 0   ;;  %v568_v1 = vld [vmem:[#allocation2 + $0x18] sm:$0xff]  ;;  %v567_v3 = vld [vmem:[#allocation2 + $0x10] sm:$0xff]  ;;  %v566_v5 = vld [vmem:[#allocation2 + $0x8] sm:$0xff]  ;;  %v730_v26 = vlaneseq }
  0x41   : > { %2323 = vsyncadd (%p2775_p5), [#allocation6], 4294966272  ;;  %2014 = vmatprep.subr.mxu1 %v2349_v0  ;;  %2003 = vmatprep.subr.mxu0 %v2349_v0  ;;  %v490_v2 = vld [vmem:[%s2755_s4 + $0x18] sm:$0xff]  ;;  %v489_v4 = vld [vmem:[%s2755_s4 + $0x10] sm:$0xff]  ;;  %vm491_vm1 = vcmask 261120   ;;  %v2351_v13 = vmov 0  }
  0x42   : > { %2022 = vmatprep.mubr.msk.f32.mxu1 %vm2350_vm0, %v2349_v0  ;;  %s2521_s19 = scalar_select %p466_p3, %s2439_s21, 1  ;;  %2011 = vmatprep.mubr.msk.f32.mxu0 %vm2350_vm0, %v2349_v0  ;;  %v488_v6 = vld [vmem:[%s2755_s4 + $0x8] sm:$0xff]  ;;  %v565_v7 = vld [vmem:[#allocation2] sm:$0xff]  ;;  %v645_v11 = vld [vmem:[#allocation5 + $0x18] sm:$0xff]  ;;  %vm742_vm3 = vcmask 64512   ;;  %v731_v28 = vshrl.u32 %v730_v26, 7 }
  0x43   : > { %2015 = vmatpush3.msra.mxu1 %v568_v1  ;;  %2004 = vmatpush3.msra.mxu0 %v490_v2  ;;  %v487_v8 = vld [vmem:[%s2755_s4] sm:$0xff]  ;;  %v644_v12 = vld [vmem:[#allocation5 + $0x10] sm:$0xff]  ;;  %v643_v15 = vld [vmem:[#allocation5 + $0x8] sm:$0xff]  ;;  %s2352_s12 = smov 120   ;;  %v739_v33 = vand.u32 127, %v730_v26  ;;  %s2354_s30 = smov 104  }
  0x44   : > { %s2526_s29 = sshll.u32 %s2521_s19, 3  ;;  %2016 = vmatprep.subr.mxu1 %v2349_v0  ;;  %2005 = vmatprep.subr.mxu0 %v2349_v0  ;;  %v642_v17 = vld [vmem:[#allocation5] sm:$0xff]  ;;  %s480_s13 = scalar_lea.vmem %s2754_s3, %s2521_s19  ;;  %v732_v29 = vsub.s32 0, %v731_v28  ;;  %v717_v60 = vld [vmem:[#allocation7 + $0x8] sm:$0xff]  ;;  %v719_v34 = vld [vmem:[#allocation7 + $0x18] sm:$0xff] }
  0x45   : > { %s473_s26 = scalar_lea.vmem %s2752_s1, %s2526_s29  ;;  %s469_s15 = scalar_lea.vmem %s2751_s0, %s2526_s29  ;;  %2017 = vmatpush3.msra.mxu1 %v567_v3  ;;  %2006 = vmatpush3.msra.mxu0 %v489_v4  ;;  %v722_v27 = vld [vmem:[%s480_s13] sm:$0x1]  ;;  %vm740_vm7 = vcmp.gt.s32.totalorder %v739_v33, %v731_v28 }
  0x46   : > { %2018 = vmatprep.subr.mxu1 %v2349_v0  ;;  %2007 = vmatprep.subr.mxu0 %v2349_v0  ;;  %v486_v9 = vld [vmem:[%s473_s26] sm:$0xff]  ;;  %s477_s24 = scalar_lea.vmem %s2753_s2, %s2526_s29  ;;  %vm723_vm4 = vcmp.gt.f32.partialorder %v722_v27, 0.5  ;;  %s2353_s19 = smov 112  }
  0x47   : > { %2019 = vmatpush3.msra.mxu1 %v566_v5  ;;  %2008 = vmatpush3.msra.mxu0 %v488_v6  ;;  %v2552_v10 = vld [vmem:[%s469_s15] sm:$0xff]  ;;  %v729_v30 = vsel %vm723_vm4, 1, %v2351_v13  ;;  %s463_s15 = sand.u32 1, %s2334_s18   ;;  %s1963_s16 = sshll.u32 %s2439_s21, 9 }
  0x48   : > { %2020 = vmatprep.subr.mxu1 %v2349_v0  ;;  %2009 = vmatprep.subr.mxu0 %v2349_v0  ;;  %v720_v14 = vld [vmem:[%s477_s24] sm:$0xff]  ;;  %v733_v31 = vrot.slane %v729_v30, %v732_v29  ;;  %s1929_s22 = sshll.u32 %s463_s15, 5  ;;  %s2694_s14 = scalar_lea.hbm %s2762_s11, %s1963_s16 }
  0x49   : > { %2021 = vmatpush3.msra.mxu1 %v565_v7  ;;  %2010 = vmatpush3.msra.mxu0 %v487_v8  ;;  %vm721_vm2 = vcmp.gt.f32.partialorder %v720_v14, 0.5  ;;  %s2625_s25 = scalar_lea.vmem [#allocation8], %s1929_s22  ;;  %v716_v1 = vld [vmem:[#allocation7] sm:$0xff]  ;;  %s2700_s13 = scalar_lea.sflag [#allocation4], %s463_s15 }
  0x4a   : > { %2023 = vmatmul.mubr.msk.f32.vlgmr.msra.gmra.mxu1 %vm491_vm1, %v486_v9  ;;  %2012 = vmatmul.mubr.msk.f32.vlgmr.msra.gmra.mxu0 %vm491_vm1, %v2552_v10  ;;  %v724_v16 = vsel %vm721_vm2, 1, %v2351_v13  ;;  %vm734_vm5 = vcmp.eq.s32.totalorder %v733_v31, 1  ;;  %s1769_s24 = sshll.u32 %s2625_s25, 4  ;;  %p2778_p12 = scmp.ne.s32.totalorder %s2768_s27, 0  ;;  %s2696_s24 = int_to_ptr.vmem [resolvable:$true] %s1769_s24 }
  0x4b   : > { %2036 = vmatprep.subr.mxu1 %v2349_v0  ;;  %2038 = vmatprep.mubr.msk.f32.mxu1 %vm2350_vm0, %v2349_v0  ;;  %s2355_s21 = smov [#allocation8]  }
  0x4c   : > { %2025 = vmatprep.subr.mxu0 %v2349_v0  ;;  %2033 = vmatprep.mubr.msk.f32.mxu0 %vm2350_vm0, %v2349_v0  ;;  %s2278_s22 = sshll.u32 %s2355_s21, 4  ;;  %s2279_s22 = int_to_ptr.vmem [resolvable:$false] %s2278_s22 }
  0x4d   : > { %2176 = vset.pattern.permute.xlu1 %v2351_v13  ;;  %2026 = vmatpush3.msra.mxu0 %v645_v11  ;;  %p2281_p7 = scmp.lt.s32.totalorder %s2696_s24, %s2279_s22 }
  0x4e   : > { %2027 = vmatprep.subr.mxu0 %v2349_v0  ;;  %2177 = vset.pattern.permute.xlu0 %v2351_v13 }
  0x4f   : > { %2028 = vmatpush3.msra.mxu0 %v644_v12  ;;  %726 = vperm.xlu1 %2176, %v724_v16  }
  0x50   : > { %2029 = vmatprep.subr.mxu0 %v2349_v0 }
  0x51   : > { %2030 = vmatpush3.msra.mxu0 %v643_v15 }
  0x52   : > { %2031 = vmatprep.subr.mxu0 %v2349_v0 }
  0x53   : > { %2032 = vmatpush3.msra.mxu0 %v642_v17 }
  0x54   : > { %2034 = vmatmul.mubr.msk.f32.vlgmr.msra.gmra.mxu0 %vm491_vm1, %v486_v9  ;;  %2046 = vmatprep.subr.mxu0 %v2349_v0 }
  0x55   : > { %2048 = vmatprep.mubr.msk.f32.mxu0 %vm2350_vm0, %v2349_v0 }
  0xca   : > { %v727_v32 = vpop.permute.xlu1 %726 }
  0xcb   : > { %vm728_vm6 = vcmp.eq.s32.totalorder %v727_v32, 1 }
  0xcc   : > { %vm735_vm8 = vmor %vm728_vm6, %vm734_vm5 }
  0xcd   : > { %vm2604_vm9 = vmor %vm735_vm8, %vm740_vm7 }
 0x10a   : > { %v2576_v18 = vpop.f32.mrf.mxu1  ;;  %v2578_v19 = vpop.f32.mrf.mxu0 }
 0x10b   : > { %910 = vrot.lane.b32.xlu0 %v2576_v18, %s2352_s12  ;;  %2037 = vmatpush3.xpose.msk.msra.mxu1 %vm742_vm3, %v2576_v18 }
 0x10c   : > { %v2024_v20 = vpop.f32.mrf.mxu1  ;;  %v2013_v21 = vpop.f32.mrf.mxu0  ;;  %2041 = vmatprep.subr.mxu1 %v2349_v0 }
 0x10e   : > { %2039 = vmatmul.mubr.msk.f32.vlgmr.msra.gmra.mxu1 %vm742_vm3, %v2578_v19 }
 0x10f   : > { %908 = vrot.lane.b32.xlu0 %v2578_v19, %s2352_s12  ;;  %2043 = vmatprep.mubr.msk.f32.mxu1 %vm2350_vm0, %v2349_v0 }
 0x114   : > { %v2591_v22 = vpop.f32.mrf.mxu0 }
 0x115   : > { %2042 = vmatpush3.msra.mxu1 %v2591_v22 }
 0x116   : > { %v2035_v23 = vpop.f32.mrf.mxu0  ;;  %2051 = vmatprep.subr.mxu1 %v2349_v0 }
 0x17d   : > { %v911_v24 = vpop.permute.xlu0 %910 }
 0x17e   : > { %2047 = vmatpush3.xpose.msk.msra.mxu0 %vm742_vm3, %v911_v24 }
 0x17f   : > { %2056 = vmatprep.subr.mxu0 %v2349_v0 }
 0x181   : > { %v909_v25 = vpop.permute.xlu0 %908 }
 0x182   : > { %2049 = vmatmul.mubr.msk.f32.vlgmr.msra.gmra.mxu0 %vm742_vm3, %v909_v25 }
 0x183   : > { %2058 = vmatprep.mubr.msk.f32.mxu0 %vm2350_vm0, %v2349_v0  ;;  %2057 = vmatpush3.msra.mxu0 %v717_v60 }
 0x184   : > { %2066 = vmatprep.subr.mxu0 %v2349_v0 }
 0x1ce   : > { %v815_v35 = vpop.f32.mrf.mxu1 }
 0x1cf   : > { %v819_v36 = vmul.f32 0.35355338, %v815_v35 }
 0x1d0   : > { %v2040_v37 = vpop.f32.mrf.mxu1 }
 0x1d1   : > { %v820_v38 = vsel %vm2604_vm9, -inf, %v819_v36 }
 0x1d2   : > { %v821_v39 = vsel %vm742_vm3, %v820_v38, -inf }
 0x1d3   : > { %822 = vmax.xlane.f32.xlu1 %v821_v39 }
 0x242   : > { %v982_v40 = vpop.f32.mrf.mxu0 }
 0x243   : > { %v986_v41 = vmul.f32 0.35355338, %v982_v40 }
 0x244   : > { %v2050_v42 = vpop.f32.mrf.mxu0 }
 0x245   : > { %v987_v43 = vsel %vm2604_vm9, -inf, %v986_v41 }
 0x246   : > { %v988_v44 = vsel %vm742_vm3, %v987_v43, -inf }
 0x247   : > { %989 = vmax.xlane.f32.xlu0 %v988_v44 }
 0x25c   : > { %v823_v45 = vpop.xlane.xlu1 %822 }
 0x25d   : > { %v824_v46 = vsub.f32 %v820_v38, %v823_v45 }
 0x25f   : > { %v825_v47 = vmul.f32 1.442695, %v824_v46 }
 0x261   : > { %2178 = vpow2.f32 %v825_v47 }
 0x26e   : > { %v2179_v48 = vpop.eup %2178 }
 0x26f   : > { %v827_v49 = vsel %vm742_vm3, %v2179_v48, 0.0 }
 0x270   : > { %828 = vadd.xlane.f32.xlu0 %v827_v49 }
 0x286   : > { %1004 = vrot.lane.b32.xlu0 %v2591_v22, %s2352_s12 }
 0x2d0   : > { %v990_v50 = vpop.xlane.xlu0 %989 }
 0x2d1   : > { %v991_v51 = vsub.f32 %v987_v43, %v990_v50 }
 0x2d3   : > { %v992_v52 = vmul.f32 1.442695, %v991_v51 }
 0x2d5   : > { %2180 = vpow2.f32 %v992_v52 }
 0x2e2   : > { %v2181_v53 = vpop.eup %2180 }
 0x2e3   : > { %v994_v54 = vsel %vm742_vm3, %v2181_v53, 0.0 }
 0x2e4   : > { %995 = vadd.xlane.f32.xlu1 %v994_v54 }
 0x2f5   : > { %1228 = vrot.lane.b32.xlu1 %v2576_v18, %s2353_s19 }
 0x2f9   : > { %1226 = vrot.lane.b32.xlu1 %v2578_v19, %s2353_s19  ;;  %v829_v55 = vpop.xlane.xlu0 %828 }
 0x2fa   : > { %2182 = vrcp.f32 %v829_v55 }
 0x2fd   : > { %v1005_v59 = vpop.permute.xlu0 %1004 }
 0x307   : > { %v2183_v56 = vpop.eup %2182 }
 0x308   : > { %v831_v57 = vmul.f32 %v2183_v56, %v2179_v48 }
 0x30a   : > { %832 = vst.msk [vmem:[%s2625_s25] sm:$0xff] %vm742_vm3, %v831_v57  ;;  %vm833_vm10 = vcmp.ne.f32.partialorder %v831_v57, %v831_v57 }
 0x30b   : > { %v834_v58 = vsel %vm833_vm10, 0.0, %v831_v57 }
 0x30c   : > { %2044 = vmatmul.mubr.msk.f32.vlgmr.msra.gmra.mxu1 %vm742_vm3, %v834_v58 }
 0x30d   : > { %2052 = vmatpush3.msra.mxu1 %v1005_v59  ;;  %2053 = vmatprep.mubr.msk.f32.mxu1 %vm2350_vm0, %v2349_v0 }
 0x30e   : > { %2061 = vmatprep.subr.mxu1 %v2349_v0 }
 0x36d   : > { %v996_v61 = vpop.xlane.xlu1 %995 }
 0x36e   : > { %2184 = vrcp.f32 %v996_v61 }
 0x371   : > { %v1229_v5 = vpop.permute.xlu1 %1228 }
 0x375   : > { %v1227_v8 = vpop.permute.xlu1 %1226 }
 0x37b   : > { %v2185_v62 = vpop.eup %2184 }
 0x37c   : > { %v998_v63 = vmul.f32 %v2185_v62, %v2181_v53 }
 0x37e   : > { %1942 = vst.msk [vmem:[%s2625_s25 + $0x8] sm:$0xff] %vm742_vm3, %v998_v63  ;;  %vm1001_vm11 = vcmp.ne.f32.partialorder %v998_v63, %v998_v63 }
 0x37f   : > { %v1002_v2 = vsel %vm1001_vm11, 0.0, %v998_v63 }
 0x380   : > { %2054 = vmatmul.mubr.msk.f32.vlgmr.msra.gmra.mxu1 %vm742_vm3, %v1002_v2 }
 0x381   : > { %2062 = vmatpush3.msra.mxu1 %v716_v1  ;;  %2063 = vmatprep.mubr.msk.f32.mxu1 %vm2350_vm0, %v2349_v0 }
 0x382   : > { %2071 = vmatprep.subr.mxu1 %v2349_v0 }
 0x3cc   : > { %v904_v3 = vpop.f32.mrf.mxu1 }
 0x3cd   : > { %2064 = vmatmul.mubr.msk.f32.vlgmr.msra.gmra.mxu1 %vm742_vm3, %v904_v3 }
 0x3ce   : > { %v2045_v4 = vpop.f32.mrf.mxu1  ;;  %2073 = vmatprep.mubr.msk.f32.mxu1 %vm2350_vm0, %v2349_v0 }
 0x440   : > { %v1076_v6 = vpop.f32.mrf.mxu1 }
 0x441   : > { %2059 = vmatmul.mubr.msk.f32.vlgmr.msra.gmra.mxu0 %vm742_vm3, %v1076_v6 }
 0x442   : > { %2067 = vmatpush3.xpose.msk.msra.mxu0 %vm742_vm3, %v1229_v5  ;;  %v2055_v7 = vpop.f32.mrf.mxu1  ;;  %2068 = vmatprep.mubr.msk.f32.mxu0 %vm2350_vm0, %v2349_v0 }
 0x443   : > { %2076 = vmatprep.subr.mxu0 %v2349_v0 }
 0x445   : > { %2069 = vmatmul.mubr.msk.f32.vlgmr.msra.gmra.mxu0 %vm742_vm3, %v1227_v8 }
 0x446   : > { %2078 = vmatprep.mubr.msk.f32.mxu0 %vm2350_vm0, %v2349_v0 }
 0x48d   : > { %v1222_v9 = vpop.f32.mrf.mxu1 }
 0x48f   : > { %v2065_v11 = vpop.f32.mrf.mxu1 }
 0x501   : > { %v1149_v12 = vpop.f32.mrf.mxu0 }
 0x503   : > { %v2060_v13 = vpop.f32.mrf.mxu0 }
 0x505   : > { %v1300_v14 = vpop.f32.mrf.mxu0 }
 0x506   : > { %v1304_v15 = vmul.f32 0.35355338, %v1300_v14 }
 0x507   : > { %v2070_v16 = vpop.f32.mrf.mxu0 }
 0x508   : > { %v1305_v17 = vsel %vm2604_vm9, -inf, %v1304_v15 }
 0x509   : > { %v1306_v20 = vsel %vm742_vm3, %v1305_v17, -inf }
 0x50a   : > { %1307 = vmax.xlane.f32.xlu0 %v1306_v20 }
 0x520   : > { %1321 = vrot.lane.b32.xlu0 %v2591_v22, %s2353_s19  ;;  %s2274_s19 = scalar_lea.vmem %s2696_s24, 512 }
 0x521   : > { %p2275_p10 = scmp.ne.s32.totalorder %s2696_s24, %s2274_s19 }
 0x523   : > { %p2276_p2 = pnand %p2275_p10, %p2778_p12 }
 0x524   : > { %1471 = vrot.lane.b32.xlu0 %v2578_v19, %s2354_s30 }
 0x525   : > { %p2277_p4 = pneg %p2276_p2 }
 0x593   : > { %v1308_v21 = vpop.xlane.xlu0 %1307 }
 0x594   : > { %v1309_v23 = vsub.f32 %v1305_v17, %v1308_v21 }
 0x596   : > { %v1310_v24 = vmul.f32 1.442695, %v1309_v23 }
 0x597   : > { %v1322_v25 = vpop.permute.xlu0 %1321 }
 0x598   : > { %2186 = vpow2.f32 %v1310_v24  ;;  %2072 = vmatpush3.msra.mxu1 %v1322_v25 }
 0x599   : > { %2081 = vmatprep.subr.mxu1 %v2349_v0 }
 0x59b   : > { %v1472_v32 = vpop.permute.xlu0 %1471 }
 0x5a5   : > { %v2187_v26 = vpop.eup %2186 }
 0x5a6   : > { %v1312_v27 = vsel %vm742_vm3, %v2187_v26, 0.0 }
 0x5a7   : > { %1313 = vadd.xlane.f32.xlu1 %v1312_v27 }
 0x5b8   : > { %1473 = vrot.lane.b32.xlu1 %v2576_v18, %s2354_s30  ;;  %v718_v18 = vld [vmem:[#allocation7 + $0x10] sm:$0xff] }
 0x5b9   : > { %2077 = vmatpush3.msra.mxu0 %v718_v18 }
 0x5ba   : > { %2086 = vmatprep.subr.mxu0 %v2349_v0 }
 0x630   : > { %v1314_v28 = vpop.xlane.xlu1 %1313 }
 0x631   : > { %2188 = vrcp.f32 %v1314_v28 }
 0x634   : > { %v1474_v31 = vpop.permute.xlu1 %1473 }
 0x63e   : > { %v2189_v29 = vpop.eup %2188 }
 0x63f   : > { %v1316_v19 = vmul.f32 %v2189_v29, %v2187_v26 }
 0x641   : > { %1948 = vst.msk [vmem:[%s2625_s25 + $0x10] sm:$0xff] %vm742_vm3, %v1316_v19  ;;  %vm1319_vm12 = vcmp.ne.f32.partialorder %v1316_v19, %v1316_v19 }
 0x642   : > { %v1320_v30 = vsel %vm1319_vm12, 0.0, %v1316_v19 }
 0x643   : > { %2074 = vmatmul.mubr.msk.f32.vlgmr.msra.gmra.mxu1 %vm742_vm3, %v1320_v30 }
 0x644   : > { %2082 = vmatpush3.xpose.msk.msra.mxu1 %vm742_vm3, %v1474_v31  ;;  %2083 = vmatprep.mubr.msk.f32.mxu1 %vm2350_vm0, %v2349_v0 }
 0x645   : > { %2091 = vmatprep.subr.mxu1 %v2349_v0 }
 0x647   : > { %2084 = vmatmul.mubr.msk.f32.vlgmr.msra.gmra.mxu1 %vm742_vm3, %v1472_v32 }
 0x648   : > { %2093 = vmatprep.mubr.msk.f32.mxu1 %vm2350_vm0, %v2349_v0  ;;  %2092 = vmatpush3.msra.mxu1 %v719_v34 }
 0x703   : > { %v1393_v33 = vpop.f32.mrf.mxu1 }
 0x704   : > { %2079 = vmatmul.mubr.msk.f32.vlgmr.msra.gmra.mxu0 %vm742_vm3, %v1393_v33 }
 0x705   : > { %v2075_v35 = vpop.f32.mrf.mxu1  ;;  %2088 = vmatprep.mubr.msk.f32.mxu0 %vm2350_vm0, %v2349_v0  ;;  %v1223_v0 = vadd.f32 %v1222_v9, %v1149_v12 }
 0x707   : > { %v1545_v36 = vpop.f32.mrf.mxu1 }
 0x708   : > { %v1549_v37 = vmul.f32 0.35355338, %v1545_v36 }
 0x709   : > { %v2085_v38 = vpop.f32.mrf.mxu1 }
 0x70a   : > { %v1550_v39 = vsel %vm2604_vm9, -inf, %v1549_v37 }
 0x70b   : > { %v1551_v40 = vsel %vm742_vm3, %v1550_v39, -inf }
 0x70c   : > { %1552 = vmax.xlane.f32.xlu1 %v1551_v40 }
 0x795   : > { %v1553_v41 = vpop.xlane.xlu1 %1552 }
 0x796   : > { %v1554_v42 = vsub.f32 %v1550_v39, %v1553_v41 }
 0x798   : > { %v1555_v43 = vmul.f32 1.442695, %v1554_v42 }
 0x79a   : > { %2190 = vpow2.f32 %v1555_v43 }
 0x7a7   : > { %v2191_v44 = vpop.eup %2190 }
 0x7a8   : > { %v1557_v45 = vsel %vm742_vm3, %v2191_v44, 0.0 }
 0x7a9   : > { %1558 = vadd.xlane.f32.xlu0 %v1557_v45 }
 0x7bf   : > { %1566 = vrot.lane.b32.xlu0 %v2591_v22, %s2354_s30 }
 0x7c4   : > { %v1466_v46 = vpop.f32.mrf.mxu0 }
 0x7c5   : > { %v1470_v47 = vadd.f32 %v1466_v46, %v1223_v0 }
 0x7c6   : > { %v2080_v48 = vpop.f32.mrf.mxu0 }
 0x832   : > { %v1559_v49 = vpop.xlane.xlu0 %1558 }
 0x833   : > { %2192 = vrcp.f32 %v1559_v49 }
 0x836   : > { %v1567_v50 = vpop.permute.xlu0 %1566 }
 0x837   : > { %2087 = vmatpush3.msra.mxu0 %v1567_v50 }
 0x840   : > { %v2193_v51 = vpop.eup %2192 }
 0x841   : > { %v1561_v52 = vmul.f32 %v2193_v51, %v2191_v44 }
 0x843   : > { %1953 = vst.msk [vmem:[%s2625_s25 + $0x18] sm:$0xff] %vm742_vm3, %v1561_v52  ;;  %vm1564_vm13 = vcmp.ne.f32.partialorder %v1561_v52, %v1561_v52  ;;  %s2280_s25 = scalar_lea.vmem %s2279_s22, 1024 }
 0x844   : > { %v1565_v53 = vsel %vm1564_vm13, 0.0, %v1561_v52  ;;  %p2282_p8 = scmp.lt.s32.totalorder %s2280_s25, %s2274_s19 }
 0x845   : > { %2089 = vmatmul.mubr.msk.f32.vlgmr.msra.gmra.mxu0 %vm742_vm3, %v1565_v53 }
 0x846   : > { %p2283_p11 = por %p2282_p8, %p2281_p7 }
 0x848   : > { %p2284_p0 = pnand %p2283_p11, %p2277_p4 }
 0x905   : > { %v1638_v22 = vpop.f32.mrf.mxu0 }
 0x906   : > { %2094 = vmatmul.mubr.msk.f32.vlgmr.msra.gmra.mxu1 %vm742_vm3, %v1638_v22 }
 0x907   : > { %v2090_v54 = vpop.f32.mrf.mxu0 }
 0x9c6   : > { %v1711_v55 = vpop.f32.mrf.mxu1 }
 0x9c7   : > { %v1715_v56 = vadd.f32 %v1711_v55, %v1470_v47 }
 0x9c8   : > { %v2095_v57 = vpop.f32.mrf.mxu1 }
 0x9c9   : > { %v1716_v58 = vadd.f32 %v1715_v56, %v2552_v10 }
 0x9cb   : > { %v1717_v59 = vsel %vm491_vm1, %v1716_v58, 0.0 }
 0x9cc   : > { %1718 = vadd.xlane.f32.xlu1 %v1717_v59 }
 0xa55   : > { %v1719_v60 = vpop.xlane.xlu1 %1718 }
 0xa56   : > { %v1721_v61 = vmul.f32 0.03125, %v1719_v60 }
 0xa58   : > { %v1722_v62 = vsub.f32 %v1716_v58, %v1721_v61 }
 0xa5a   : > { %v1723_v63 = vmul.f32 %v1722_v62, %v1722_v62 }
 0xa5c   : > { %v1724_v1 = vsel %vm491_vm1, %v1723_v63, 0.0 }
 0xa5d   : > { %1725 = vadd.xlane.f32.xlu1 %v1724_v1 }
 0xa5e   : > { %2287 = shalt.err (!%p2284_p0)
}
 0xa5f   : > { %s2288_s15 = scalar_lea.hbm %s2694_s14, 512  ;;  %s2292_s12 = scalar_lea.hbm %s2762_s11, 1024 }
 0xa60   : > { %p2289_p6 = scmp.ne.s32.totalorder %s2694_s14, %s2288_s15  ;;  %p2293_p1 = scmp.lt.s32.totalorder %s2694_s14, %s2762_s11 }
 0xa61   : > { %p2294_p5 = scmp.lt.s32.totalorder %s2292_s12, %s2288_s15 }
 0xa62   : > { %p2290_p9 = pnand %p2289_p6, %p2778_p12 }
 0xa63   : > { %p2295_p3 = por %p2294_p5, %p2293_p1 }
 0xa64   : > { %p2291_p13 = pneg %p2290_p9 }
 0xa66   : > { %p2296_p10 = pnand %p2295_p3, %p2291_p13 }
 0xa68   : > { %2299 = shalt.err (!%p2296_p10)
}
 0xa69   : > { %s2356_s19 = smov 128   ;;  %s2357_s22 = smov 8   ;;  %v1956_v5 = vld [vmem:[%s2759_s8] ss:$0 sm:$0xff] }
 0xa6a   : > { %2108 = dma.vmem_to_hbm [thread:$0]  (%p2778_p12), %s2696_s24, 512, %s2694_s14, %s2700_s13, %s2356_s19, %s2356_s19, %s2357_s22  }
 0xa6b   : > { %v1957_v7 = vld [vmem:[%s2760_s9] ss:$0 sm:$0xff]  ;;  %s484_s27 = scalar_lea.vmem %s2761_s10, %s2526_s29 }
 0xae6   : > { %v1726_v10 = vpop.xlane.xlu1 %1725 }
 0xae7   : > { %v1727_v2 = vmul.f32 0.03125, %v1726_v10 }
 0xae9   : > { %v1728_v3 = vadd.f32 1e-05, %v1727_v2 }
 0xaeb   : > { %2194 = vrsqrt.f32 %v1728_v3 }
 0xaf8   : > { %v2195_v4 = vpop.eup %2194 }
 0xaf9   : > { %v1730_v6 = vmul.f32 %v2195_v4, %v1722_v62 }
 0xafb   : > { %v1738_v8 = vmul.f32 %v1956_v5, %v1730_v6 }
 0xafd   : > { %v1746_v9 = vadd.f32 %v1957_v7, %v1738_v8 }
 0xaff   : > { %1747 = vst.msk [vmem:[%s484_s27] sm:$0xff] %vm491_vm1, %v1746_v9 }
 0xb00 PF: > { %p2130_p12 = scmp.ge.s32.totalorder %s2342_s20, 2  ;;  %s1791_s24 = sand.u32 1, %s2330_s17  }
 0xb01   : > { %p2779_p2 = scmp.ne.s32.totalorder %s2769_s28, 0  ;;  %s1792_s14 = scalar_lea.sflag [#allocation4], %s1791_s24 }
 0xb03   : > { %p2121_p4 = pnand %p2130_p12, %p2779_p2 }
 0xb05   : > { %p2122_p7 = pneg %p2121_p4 }
 0xb07   : > { %2325 = dma.done.wait (%p2122_p7), %s1792_s14, 512  }
 0xb08   : > { %2327 = vsyncadd (%p2122_p7), %s1792_s14, 4294966784  ;;  %s2780_s13 = sld [smem:[#allocation12_spill]]  ;;  %p24_p8 = scmp.ge.s32.totalorder %s2443_s23, 4  }
 0xb09   : > { %s2781_s19 = sld [smem:[#allocation13_spill]]  ;;  %s2782_s17 = smov %s2334_s18 }
 0xb0a   : > { %s2784_s20 = smov %s2443_s23  ;;  %26 = sbr.rel (!%p24_p8) target bundleno = 5 (0x5), region = 132 }
 0xb0e   : > { %s2783_s18 = smov %s2780_s13 }
 0xb0f   :  { %1797 = vsyncpa [#allocation3], 1 }
 0xb10   :  { %1799 = vsyncpa [#allocation3 + $0x1], 1 }
 0xb11   :  { %1800 = vsyncpa [#allocation6], 1 }
 0xb12   :  { %1801 = vsyncpa [#allocation4], 1 }
 0xb13   :  { %1803 = vsyncpa [#allocation4 + $0x1], 1 }

// kernel: decoder_layer.4
= control target key start
LH: loop header
LB: loop body
LE: loop exit
PB: predicated region body
PF: predicated region fallthrough
CT: control target
= control target key end

     0   :  { %s2644_s0 = inlined_call_operand.vmem [shape: f32[2,8,32], index: 0, kind: input, shape index: {}]   ;;  %s2645_s1 = inlined_call_operand.vmem [shape: f32[2,12,32], index: 1, kind: input, shape index: {}]   ;;  %s2646_s2 = inlined_call_operand.vmem [shape: f32[2,8,1], index: 2, kind: input, shape index: {}]   ;;  %s2647_s3 = inlined_call_operand.vmem [shape: f32[2,1,12], index: 3, kind: input, shape index: {}]   ;;  %s2648_s4 = inlined_call_operand.vmem [shape: f32[32,32], index: 4, kind: input, shape index: {}]   ;;  %s2649_s5 = inlined_call_operand.vmem [shape: f32[32,32], index: 5, kind: input, shape index: {}]   ;;  %s2650_s6 = inlined_call_operand.vmem [shape: f32[32,32], index: 6, kind: input, shape index: {}]   ;;  %s2651_s7 = inlined_call_operand.vmem [shape: f32[32,32], index: 7, kind: input, shape index: {}]   ;;  %s2652_s8 = inlined_call_operand.vmem [shape: f32[1,32], index: 8, kind: input, shape index: {}]   ;;  %s2653_s9 = inlined_call_operand.vmem [shape: f32[1,32], index: 9, kind: input, shape index: {}]   ;;  %s2654_s10 = inlined_call_operand.vmem [shape: f32[2,8,32], index: 10, kind: output, shape index: {0}]   ;;  %s2655_s11 = inlined_call_operand.hbm [shape: f32[2,4,8,12], index: 11, kind: output, shape index: {1}]  }
   0x1   :  { %2656 = sst [smem:[#allocation6_spill]] %s2644_s0 }
   0x2   :  { %17 = vsyncpa [#allocation3], 0 }
   0x3   :  { %19 = vsyncpa [#allocation3 + $0x1], 0  ;;  %s2294_s17 = smov 0   ;;  %s2296_s18 = smov 0  }
   0x4   :  { %s2298_s19 = smov 0   ;;  %s2300_s20 = smov 0  }
   0x5 LB: > { %s2315_s21 = sadd.s32 4294967295, %s2223_s20   ;;  %s1887_s22 = sadd.s32 4294967294, %s2223_s20   ;;  %s2223_s20 = sphi %s2300_s20, %s2667_s20   ;;  %s2219_s19 = sphi %s2298_s19, %s2666_s19   ;;  %s2215_s18 = sphi %s2296_s18, %s2665_s18   ;;  %s2211_s17 = sphi %s2294_s17, %s2664_s17  }
   0x6   : > { %s2319_s23 = sadd.s32 1, %s2223_s20   ;;  %s288_s24 = sadd.s32 1, %s2219_s19 }
   0x7   : > { %s285_s25 = ssub.s32 %s2223_s20, %s2319_s23  ;;  %p298_p0 = scmp.ne.s32.totalorder %s2219_s19, %s2215_s18 }
   0x8   : > { %p286_p1 = scmp.eq.s32.totalorder %s285_s25, 0  ;;  %p299_p2 = scmp.eq.s32.totalorder %s2315_s21, 1 }
   0x9   : > { %p304_p3 = scmp.ne.s32.totalorder %s2215_s18, %s2211_s17  ;;  %p305_p4 = scmp.eq.s32.totalorder %s1887_s22, 1 }
   0xa   : > { %s2330_s26 = scalar_select %p286_p1, %s2219_s19, %s288_s24  }
   0xb   : > { %p2332_p5 = por %p299_p2, %p298_p0  ;;  %p2336_p6 = por %p305_p4, %p304_p3 }
   0xc   : > { %2657 = sst [smem:[#allocation5_spill]] %s2330_s26  ;;  %p1890_p7 = scmp.ge.s32.totalorder %s2223_s20, 1 }
   0xd   : > { %p369_p8 = scmp.lt.s32.totalorder %s2223_s20, 3 }
   0xf   : > { %p370_p9 = pnand %p1890_p7, %p369_p8 }
  0x10   : > { %p424_p10 = scmp.lt.s32.totalorder (!%p370_p9), %s2315_s21, 1  ;;  %s2660_s0 = sld [smem:[#allocation6_spill]] (!%p370_p9) }
  0x11   : > { %373 = sbr.rel (%p370_p9) target bundleno = 2463 (0x99f), region = 60  ;;  %s2228_s24 = smov (!%p370_p9), 120  }
  0x12   : > { %s2230_s12 = smov (!%p370_p9), 104   ;;  %s421_s13 = sand.u32 (!%p370_p9), 1, %s2215_s18  }
  0x13   : > { %s1891_s14 = sshll.u32 (!%p370_p9), %s421_s13, 5 }
  0x16   : > { %v528_v0 = vld [vmem:[%s2649_s5 + $0x18] sm:$0xff]  ;;  %v527_v1 = vld [vmem:[%s2649_s5 + $0x10] sm:$0xff]  ;;  %v2225_v2 = vmov 0.0   ;;  %v526_v5 = vld [vmem:[%s2649_s5 + $0x8] sm:$0xff]  ;;  %s2360_s29 = scalar_select %p424_p10, %s2315_s21, 1  ;;  %vm451_vm0 = vcmask 261120   ;;  %v703_v26 = vlaneseq }
  0x17   : > { %1998 = vmatprep.subr.mxu1 %v528_v0  ;;  %1987 = vmatprep.subr.mxu0 %v2225_v2  ;;  %v450_v3 = vld [vmem:[%s2648_s4 + $0x18] sm:$0xff]  ;;  %v449_v4 = vld [vmem:[%s2648_s4 + $0x10] sm:$0xff]  ;;  %v448_v6 = vld [vmem:[%s2648_s4 + $0x8] sm:$0xff]  ;;  %vm2226_vm1 = vmmov 0   ;;  %v2227_v12 = vmov 0   ;;  %vm709_vm2 = vcmask 64512  }
  0x18   : > { %1999 = vmatpush3.msra.mxu1 %v528_v0  ;;  %1988 = vmatpush3.msra.mxu0 %v450_v3  ;;  %v525_v7 = vld [vmem:[%s2649_s5] sm:$0xff]  ;;  %s1936_s15 = sshll.u32 %s2360_s29, 4  ;;  %s2371_s16 = sshll.u32 %s2360_s29, 3  ;;  %v613_v13 = vld [vmem:[%s2650_s6 + $0x18] sm:$0xff]  ;;  %v612_v14 = vld [vmem:[%s2650_s6 + $0x10] sm:$0xff]  ;;  %v704_v28 = vshrl.u32 %v703_v26, 7 }
  0x19   : > { %2000 = vmatprep.subr.mxu1 %v527_v1  ;;  %1989 = vmatprep.subr.mxu0 %v2225_v2  ;;  %s432_s25 = scalar_lea.vmem %s2645_s1, %s1936_s15  ;;  %s427_s26 = scalar_lea.vmem %s2660_s0, %s2371_s16  ;;  %v447_v10 = vld [vmem:[%s2648_s4] sm:$0xff]  ;;  %v611_v15 = vld [vmem:[%s2650_s6 + $0x8] sm:$0xff]  ;;  %vm791_vm8 = vcmask 97280   ;;  %vm809_vm9 = vcmask 1043456  }
  0x1a   : > { %2001 = vmatpush3.msra.mxu1 %v527_v1  ;;  %1990 = vmatpush3.msra.mxu0 %v449_v4  ;;  %v445_v8 = vld [vmem:[%s432_s25] sm:$0xff]  ;;  %v446_v9 = vld [vmem:[%s432_s25 + $0x8] sm:$0xf]  ;;  %s436_s22 = scalar_lea.vmem %s2646_s2, %s2371_s16  ;;  %s439_s30 = scalar_lea.vmem %s2647_s3, %s2360_s29  ;;  %v705_v29 = vsub.s32 0, %v704_v28 }
  0x1b   : > { %2002 = vmatprep.subr.mxu1 %v526_v5  ;;  %1991 = vmatprep.subr.mxu0 %v2225_v2  ;;  %v2386_v11 = vld [vmem:[%s427_s26] sm:$0xff]  ;;  %s2229_s29 = smov 112   ;;  %s2490_s26 = scalar_lea.vmem [#allocation2], %s1891_s14  ;;  %v690_v3 = vld [vmem:[%s2651_s7 + $0x8] sm:$0xff] }
  0x1c   : > { %2003 = vmatpush3.msra.mxu1 %v526_v5  ;;  %1992 = vmatpush3.msra.mxu0 %v448_v6  ;;  %v693_v16 = vld [vmem:[%s436_s22] sm:$0xff]  ;;  %s1937_s15 = sshll.u32 %s2315_s21, 9  ;;  %s2231_s21 = smov [#allocation2]  }
  0x1d   : > { %2004 = vmatprep.subr.mxu1 %v525_v7  ;;  %2006 = vmatprep.mubr.msk.f32.mxu1 %vm451_vm0, %v445_v8  ;;  %v610_v18 = vld [vmem:[%s2650_s6] sm:$0xff]  ;;  %vm694_vm3 = vcmp.gt.f32.partialorder %v693_v16, 0.5 }
  0x1e   : > { %2005 = vmatpush3.msra.mxu1 %v525_v7  ;;  %1993 = vmatprep.subr.mxu0 %v2225_v2  ;;  %v697_v22 = vsel %vm694_vm3, 1, %v2227_v12  ;;  %v695_v27 = vld [vmem:[%s439_s30] sm:$0x1]  ;;  %s2587_s30 = scalar_lea.hbm %s2655_s11, %s1937_s15 }
  0x1f   : > { %2007 = vmatmul.mubr.msk.f32.vlgmr.msra.gmra.mxu1 %vm451_vm0, %v446_v9  ;;  %1994 = vmatpush3.msra.mxu0 %v447_v10  ;;  %vm696_vm4 = vcmp.gt.f32.partialorder %v695_v27, 0.5  ;;  %v689_v61 = vld [vmem:[%s2651_s7] sm:$0xff] }
  0x20   : > { %1995 = vmatprep.mubr.msk.f32.mxu0 %vm2226_vm1, %v2225_v2  ;;  %2020 = vmatprep.subr.mxu1 %v2225_v2  ;;  %v702_v30 = vsel %vm696_vm4, 1, %v2227_v12 }
  0x21   : > { %1996 = vmatmul.mubr.msk.f32.vlgmr.msra.gmra.mxu0 %vm451_vm0, %v2386_v11  ;;  %2024 = vmatprep.mubr.msk.f32.mxu1 %vm2226_vm1, %v2225_v2  ;;  %v706_v31 = vrot.slane %v702_v30, %v705_v29 }
  0x22   : > { %2017 = vmatprep.mubr.msk.f32.mxu0 %vm451_vm0, %v445_v8  ;;  %2143 = vset.pattern.permute.xlu1 %v2227_v12 }
  0x23   : > { %2144 = vset.pattern.permute.xlu0 %v2227_v12  ;;  %2009 = vmatprep.subr.mxu0 %v613_v13  ;;  %vm707_vm5 = vcmp.eq.s32.totalorder %v706_v31, 1 }
  0x24   : > { %2010 = vmatpush3.msra.mxu0 %v613_v13 }
  0x25   : > { %2011 = vmatprep.subr.mxu0 %v612_v14 }
  0x26   : > { %2012 = vmatpush3.msra.mxu0 %v612_v14 }
  0x27   : > { %2013 = vmatprep.subr.mxu0 %v611_v15 }
  0x28   : > { %2014 = vmatpush3.msra.mxu0 %v611_v15 }
  0x29   : > { %2015 = vmatprep.subr.mxu0 %v610_v18 }
  0x2a   : > { %2016 = vmatpush3.msra.mxu0 %v610_v18 }
  0x2b   : > { %2018 = vmatmul.mubr.msk.f32.vlgmr.msra.gmra.mxu0 %vm451_vm0, %v446_v9  ;;  %2027 = vmatprep.subr.mxu0 %v2225_v2 }
  0x2c   : > { %2031 = vmatprep.mubr.msk.f32.mxu0 %vm2226_vm1, %v2225_v2 }
  0xdf   : > { %v2410_v17 = vpop.f32.mrf.mxu1 }
  0xe0   : > { %887 = vrot.lane.b32.xlu0 %v2410_v17, %s2228_s24  ;;  %2021 = vmatpush3.xpose.msk.msra.mxu1 %vm709_vm2, %v2410_v17 }
  0xe1   : > { %2022 = vmatprep.subr.mxu1 %v2225_v2  ;;  %v2420_v19 = vpop.f32.mrf.mxu0  ;;  %v2424_v20 = vpop.f32.mrf.mxu1 }
  0xe2   : > { %883 = vrot.lane.b32.xlu1 %v2420_v19, %s2228_s24 }
  0xe3   : > { %v1997_v21 = vpop.f32.mrf.mxu0 }
  0xe4   : > { %885 = vrot.lane.b32.xlu0 %v2424_v20, %s2228_s24  ;;  %2023 = vmatpush3.xpose.msk.msra.mxu1 %vm709_vm2, %v2424_v20 }
  0xe5   : > { %2034 = vmatprep.subr.mxu1 %v2225_v2 }
  0xe6   : > { %699 = vperm.xlu1 %2143, %v697_v22  }
  0xe7   : > { %2025 = vmatmul.mubr.msk.f32.vlgmr.msra.gmra.mxu1 %vm709_vm2, %v2420_v19 }
  0xe8   : > { %2038 = vmatprep.mubr.msk.f32.mxu1 %vm2226_vm1, %v2225_v2 }
  0xeb   : > { %v2460_v44 = vpop.f32.mrf.mxu0 }
  0xec   : > { %2028 = vmatpush3.msk.msra.mxu0 %vm809_vm9, %v2460_v44 }
  0xed   : > { %v2475_v50 = vpop.f32.mrf.mxu0  ;;  %2029 = vmatprep.subr.mxu0 %v2225_v2 }
  0xee   : > { %2030 = vmatpush3.msra.mxu0 %v2475_v50 }
  0xef   : > { %2041 = vmatprep.subr.mxu0 %v2225_v2 }
 0x152   : > { %v888_v23 = vpop.permute.xlu0 %887 }
 0x153   : > { %2035 = vmatpush3.xpose.msk.msra.mxu1 %vm709_vm2, %v888_v23 }
 0x154   : > { %2036 = vmatprep.subr.mxu1 %v2225_v2  ;;  %v884_v25 = vpop.permute.xlu1 %883 }
 0x156   : > { %v886_v24 = vpop.permute.xlu0 %885 }
 0x157   : > { %2037 = vmatpush3.xpose.msk.msra.mxu1 %vm709_vm2, %v886_v24 }
 0x158   : > { %2053 = vmatprep.subr.mxu1 %v2225_v2 }
 0x15a   : > { %2039 = vmatmul.mubr.msk.f32.vlgmr.msra.gmra.mxu1 %vm709_vm2, %v884_v25 }
 0x15b   : > { %2055 = vmatprep.mubr.msk.f32.mxu1 %vm2226_vm1, %v2225_v2  ;;  %2054 = vmatpush3.msra.mxu1 %v689_v61 }
 0x15c   : > { %2065 = vmatprep.subr.mxu1 %v2225_v2 }
 0x161   : > { %v700_v32 = vpop.permute.xlu1 %699 }
 0x162   : > { %vm701_vm6 = vcmp.eq.s32.totalorder %v700_v32, 1 }
 0x163   : > { %vm2450_vm7 = vmor %vm701_vm6, %vm707_vm5 }
 0x1a7   : > { %v785_v34 = vpop.f32.mrf.mxu1 }
 0x1a8   : > { %v789_v35 = vmul.f32 0.35355338, %v785_v34 }
 0x1a9   : > { %v2026_v36 = vpop.f32.mrf.mxu1 }
 0x1aa   : > { %v790_v37 = vsel %vm2450_vm7, -inf, %v789_v35 }
 0x1ab   : > { %v792_v38 = vsel %vm791_vm8, %v790_v37, -inf }
 0x1ac   : > { %793 = vmax.xlane.f32.xlu0 %v792_v38 }
 0x21a   : > { %v961_v39 = vpop.f32.mrf.mxu1 }
 0x21b   : > { %v965_v40 = vmul.f32 0.35355338, %v961_v39 }
 0x21c   : > { %v2040_v41 = vpop.f32.mrf.mxu1 }
 0x21d   : > { %v966_v42 = vsel %vm2450_vm7, -inf, %v965_v40 }
 0x21e   : > { %v967_v43 = vsel %vm791_vm8, %v966_v42, -inf }
 0x21f   : > { %968 = vmax.xlane.f32.xlu1 %v967_v43 }
 0x230   : > { %985 = vrot.lane.b32.xlu1 %v2460_v44, %s2228_s24 }
 0x234   : > { %1213 = vrot.lane.b32.xlu1 %v2410_v17, %s2229_s29 }
 0x235   : > { %v794_v45 = vpop.xlane.xlu0 %793 }
 0x236   : > { %v795_v46 = vsub.f32 %v790_v37, %v794_v45  ;;  %v691_v45 = vld [vmem:[%s2651_s7 + $0x10] sm:$0xff] }
 0x238   : > { %v796_v47 = vmul.f32 1.442695, %v795_v46  ;;  %1211 = vrot.lane.b32.xlu1 %v2424_v20, %s2229_s29 }
 0x23a   : > { %2145 = vpow2.f32 %v796_v47 }
 0x23c   : > { %1466 = vrot.lane.b32.xlu1 %v2410_v17, %s2230_s12 }
 0x240   : > { %1462 = vrot.lane.b32.xlu1 %v2420_v19, %s2230_s12 }
 0x247   : > { %v2146_v48 = vpop.eup %2145 }
 0x248   : > { %v798_v49 = vsel %vm791_vm8, %v2146_v48, 0.0 }
 0x249   : > { %799 = vadd.xlane.f32.xlu0 %v798_v49 }
 0x2a8   : > { %v969_v51 = vpop.xlane.xlu1 %968 }
 0x2a9   : > { %v970_v52 = vsub.f32 %v966_v42, %v969_v51 }
 0x2ab   : > { %v971_v53 = vmul.f32 1.442695, %v970_v52 }
 0x2ac   : > { %v986_v60 = vpop.permute.xlu1 %985 }
 0x2ad   : > { %2147 = vpow2.f32 %v971_v53 }
 0x2b0   : > { %v1214_v7 = vpop.permute.xlu1 %1213 }
 0x2b4   : > { %v1212_v10 = vpop.permute.xlu1 %1211 }
 0x2b8   : > { %v1467_v13 = vpop.permute.xlu1 %1466 }
 0x2ba   : > { %v2148_v54 = vpop.eup %2147 }
 0x2bb   : > { %v973_v55 = vsel %vm791_vm8, %v2148_v54, 0.0 }
 0x2bc   : > { %974 = vadd.xlane.f32.xlu0 %v973_v55  ;;  %v1463_v15 = vpop.permute.xlu1 %1462  ;;  %v692_v55 = vld [vmem:[%s2651_s7 + $0x18] sm:$0xff] }
 0x2d2   : > { %v800_v56 = vpop.xlane.xlu0 %799  ;;  %983 = vrot.lane.b32.xlu0 %v2475_v50, %s2228_s24  ;;  %s1768_s24 = sshll.u32 %s2490_s26, 4  ;;  %s2589_s24 = int_to_ptr.vmem [resolvable:$true] %s1768_s24 }
 0x2d3   : > { %2149 = vrcp.f32 %v800_v56 }
 0x2d6   : > { %1209 = vrot.lane.b32.xlu0 %v2420_v19, %s2229_s29 }
 0x2da   : > { %1464 = vrot.lane.b32.xlu0 %v2424_v20, %s2230_s12 }
 0x2e0   : > { %v2150_v57 = vpop.eup %2149 }
 0x2e1   : > { %v802_v58 = vmul.f32 %v2150_v57, %v2146_v48 }
 0x2e3   : > { %803 = vst.msk [vmem:[%s2490_s26] sm:$0xff] %vm791_vm8, %v802_v58  ;;  %vm804_vm10 = vcmp.ne.f32.partialorder %v802_v58, %v802_v58 }
 0x2e4   : > { %v805_v59 = vsel %vm804_vm10, 0.0, %v802_v58 }
 0x2e5   : > { %2032 = vmatmul.mubr.msk.f32.vlgmr.msra.gmra.mxu0 %vm791_vm8, %v805_v59 }
 0x2e6   : > { %2042 = vmatpush3.msk.msra.mxu0 %vm809_vm9, %v986_v60  ;;  %2045 = vmatprep.mubr.msk.f32.mxu0 %vm2226_vm1, %v2225_v2 }
 0x2e7   : > { %2043 = vmatprep.subr.mxu0 %v2225_v2 }
 0x345   : > { %v975_v62 = vpop.xlane.xlu0 %974 }
 0x346   : > { %2151 = vrcp.f32 %v975_v62 }
 0x349   : > { %v984_v63 = vpop.permute.xlu0 %983 }
 0x34a   : > { %2044 = vmatpush3.msra.mxu0 %v984_v63 }
 0x34b   : > { %2048 = vmatprep.subr.mxu0 %v2225_v2 }
 0x34d   : > { %v1210_v12 = vpop.permute.xlu0 %1209 }
 0x351   : > { %v1465_v14 = vpop.permute.xlu0 %1464 }
 0x353   : > { %v2152_v0 = vpop.eup %2151 }
 0x354   : > { %v977_v1 = vmul.f32 %v2152_v0, %v2148_v54 }
 0x356   : > { %1910 = vst.msk [vmem:[%s2490_s26 + $0x8] sm:$0xff] %vm791_vm8, %v977_v1  ;;  %vm980_vm11 = vcmp.ne.f32.partialorder %v977_v1, %v977_v1 }
 0x357   : > { %v981_v4 = vsel %vm980_vm11, 0.0, %v977_v1 }
 0x358   : > { %2046 = vmatmul.mubr.msk.f32.vlgmr.msra.gmra.mxu0 %vm791_vm8, %v981_v4 }
 0x359   : > { %2049 = vmatpush3.msra.mxu0 %v690_v3  ;;  %2050 = vmatprep.mubr.msk.f32.mxu0 %vm2226_vm1, %v2225_v2 }
 0x35a   : > { %2058 = vmatprep.subr.mxu0 %v2225_v2 }
 0x3a5   : > { %v879_v5 = vpop.f32.mrf.mxu0 }
 0x3a6   : > { %2056 = vmatmul.mubr.msk.f32.vlgmr.msra.gmra.mxu1 %vm709_vm2, %v879_v5 }
 0x3a7   : > { %v2033_v6 = vpop.f32.mrf.mxu0  ;;  %2069 = vmatprep.mubr.msk.f32.mxu1 %vm2226_vm1, %v2225_v2 }
 0x418   : > { %v1059_v8 = vpop.f32.mrf.mxu0 }
 0x419   : > { %2051 = vmatmul.mubr.msk.f32.vlgmr.msra.gmra.mxu0 %vm709_vm2, %v1059_v8 }
 0x41a   : > { %2059 = vmatpush3.xpose.msk.msra.mxu0 %vm709_vm2, %v1214_v7  ;;  %v2047_v9 = vpop.f32.mrf.mxu0  ;;  %2062 = vmatprep.mubr.msk.f32.mxu0 %vm2226_vm1, %v2225_v2 }
 0x41b   : > { %2060 = vmatprep.subr.mxu0 %v2225_v2 }
 0x41e   : > { %2061 = vmatpush3.xpose.msk.msra.mxu0 %vm709_vm2, %v1212_v10 }
 0x41f   : > { %2077 = vmatprep.subr.mxu0 %v2225_v2 }
 0x421   : > { %2063 = vmatmul.mubr.msk.f32.vlgmr.msra.gmra.mxu0 %vm709_vm2, %v1210_v12 }
 0x422   : > { %2078 = vmatpush3.xpose.msk.msra.mxu0 %vm709_vm2, %v1467_v13  ;;  %2081 = vmatprep.mubr.msk.f32.mxu0 %vm2226_vm1, %v2225_v2 }
 0x423   : > { %2079 = vmatprep.subr.mxu0 %v2225_v2 }
 0x426   : > { %2080 = vmatpush3.xpose.msk.msra.mxu0 %vm709_vm2, %v1465_v14 }
 0x429   : > { %2082 = vmatmul.mubr.msk.f32.vlgmr.msra.gmra.mxu0 %vm709_vm2, %v1463_v15 }
 0x466   : > { %v2530_v16 = vpop.f32.mrf.mxu1 }
 0x468   : > { %v2057_v17 = vpop.f32.mrf.mxu1 }
 0x4d9   : > { %v2532_v18 = vpop.f32.mrf.mxu0 }
 0x4da   : > { %v1206_v56 = vadd.f32 %v2530_v16, %v2532_v18 }
 0x4db   : > { %v2052_v19 = vpop.f32.mrf.mxu0 }
 0x4e1   : > { %v1287_v20 = vpop.f32.mrf.mxu0 }
 0x4e2   : > { %v1291_v21 = vmul.f32 0.35355338, %v1287_v20 }
 0x4e3   : > { %v2064_v22 = vpop.f32.mrf.mxu0 }
 0x4e4   : > { %v1292_v23 = vsel %vm2450_vm7, -inf, %v1291_v21 }
 0x4e5   : > { %v1293_v24 = vsel %vm791_vm8, %v1292_v23, -inf }
 0x4e6   : > { %1294 = vmax.xlane.f32.xlu0 %v1293_v24 }
 0x4e9   : > { %v1540_v25 = vpop.f32.mrf.mxu0 }
 0x4ea   : > { %v1544_v27 = vmul.f32 0.35355338, %v1540_v25 }
 0x4eb   : > { %v2083_v26 = vpop.f32.mrf.mxu0 }
 0x4ec   : > { %v1545_v28 = vsel %vm2450_vm7, -inf, %v1544_v27 }
 0x4ed   : > { %v1546_v29 = vsel %vm791_vm8, %v1545_v28, -inf }
 0x4fc   : > { %1310 = vrot.lane.b32.xlu0 %v2460_v44, %s2229_s29 }
 0x51b   : > { %1547 = vmax.xlane.f32.xlu0 %v1546_v29 }
 0x531   : > { %1563 = vrot.lane.b32.xlu0 %v2460_v44, %s2230_s12 }
 0x56f   : > { %v1295_v30 = vpop.xlane.xlu0 %1294 }
 0x570   : > { %v1296_v31 = vsub.f32 %v1292_v23, %v1295_v30 }
 0x572   : > { %v1297_v32 = vmul.f32 1.442695, %v1296_v31 }
 0x573   : > { %v1311_v34 = vpop.permute.xlu0 %1310 }
 0x574   : > { %2153 = vpow2.f32 %v1297_v32  ;;  %2066 = vmatpush3.msk.msra.mxu1 %vm809_vm9, %v1311_v34 }
 0x575   : > { %2067 = vmatprep.subr.mxu1 %v2225_v2 }
 0x581   : > { %v2154_v35 = vpop.eup %2153 }
 0x582   : > { %v1299_v36 = vsel %vm791_vm8, %v2154_v35, 0.0 }
 0x583   : > { %1300 = vadd.xlane.f32.xlu1 %v1299_v36 }
 0x594   : > { %1308 = vrot.lane.b32.xlu1 %v2475_v50, %s2229_s29  ;;  %s2593_s29 = scalar_lea.sflag [#allocation3], %s421_s13 }
 0x5a4   : > { %v1548_v33 = vpop.xlane.xlu0 %1547 }
 0x5a5   : > { %v1549_v37 = vsub.f32 %v1545_v28, %v1548_v33 }
 0x5a7   : > { %v1550_v38 = vmul.f32 1.442695, %v1549_v37 }
 0x5a8   : > { %v1564_v51 = vpop.permute.xlu0 %1563 }
 0x5a9   : > { %2155 = vpow2.f32 %v1550_v38 }
 0x5b6   : > { %v2156_v39 = vpop.eup %2155 }
 0x5b7   : > { %v1552_v40 = vsel %vm791_vm8, %v2156_v39, 0.0 }
 0x5b8   : > { %1553 = vadd.xlane.f32.xlu1 %v1552_v40 }
 0x5c9   : > { %1561 = vrot.lane.b32.xlu1 %v2475_v50, %s2230_s12  ;;  %s2163_s12 = scalar_lea.vmem %s2589_s24, 512 }
 0x5ca   : > { %p2164_p11 = scmp.ne.s32.totalorder %s2589_s24, %s2163_s12 }
 0x5cc   : > { %p2165_p12 = pnand %p2164_p11, %p2332_p5 }
 0x5ce   : > { %p2166_p13 = pneg %p2165_p12 }
 0x60c   : > { %v1301_v41 = vpop.xlane.xlu1 %1300 }
 0x60d   : > { %2157 = vrcp.f32 %v1301_v41 }
 0x610   : > { %v1309_v42 = vpop.permute.xlu1 %1308 }
 0x611   : > { %2068 = vmatpush3.msra.mxu1 %v1309_v42 }
 0x612   : > { %2072 = vmatprep.subr.mxu1 %v2225_v2 }
 0x61a   : > { %v2158_v43 = vpop.eup %2157 }
 0x61b   : > { %v1303_v44 = vmul.f32 %v2158_v43, %v2154_v35 }
 0x61d   : > { %1918 = vst.msk [vmem:[%s2490_s26 + $0x10] sm:$0xff] %vm791_vm8, %v1303_v44  ;;  %vm1306_vm12 = vcmp.ne.f32.partialorder %v1303_v44, %v1303_v44 }
 0x61e   : > { %v1307_v46 = vsel %vm1306_vm12, 0.0, %v1303_v44 }
 0x61f   : > { %2070 = vmatmul.mubr.msk.f32.vlgmr.msra.gmra.mxu1 %vm791_vm8, %v1307_v46 }
 0x620   : > { %2073 = vmatpush3.msra.mxu1 %v691_v45  ;;  %2074 = vmatprep.mubr.msk.f32.mxu1 %vm2226_vm1, %v2225_v2 }
 0x621   : > { %2084 = vmatprep.subr.mxu1 %v2225_v2 }
 0x641   : > { %v1554_v47 = vpop.xlane.xlu1 %1553 }
 0x642   : > { %2159 = vrcp.f32 %v1554_v47 }
 0x645   : > { %v1562_v53 = vpop.permute.xlu1 %1561 }
 0x64f   : > { %v2160_v48 = vpop.eup %2159 }
 0x650   : > { %v1556_v49 = vmul.f32 %v2160_v48, %v2156_v39 }
 0x652   : > { %1925 = vst.msk [vmem:[%s2490_s26 + $0x18] sm:$0xff] %vm791_vm8, %v1556_v49  ;;  %vm1559_vm13 = vcmp.ne.f32.partialorder %v1556_v49, %v1556_v49  ;;  %s2167_s26 = sshll.u32 %s2231_s21, 4  ;;  %s2168_s26 = int_to_ptr.vmem [resolvable:$false] %s2167_s26 }
 0x653   : > { %v1560_v54 = vsel %vm1559_vm13, 0.0, %v1556_v49  ;;  %s2169_s14 = scalar_lea.vmem %s2168_s26, 1024  ;;  %p2170_p0 = scmp.lt.s32.totalorder %s2589_s24, %s2168_s26 }
 0x654   : > { %p2171_p1 = scmp.lt.s32.totalorder %s2169_s14, %s2163_s12 }
 0x656   : > { %p2172_p2 = por %p2171_p1, %p2170_p0 }
 0x658   : > { %p2173_p3 = pnand %p2172_p2, %p2166_p13 }
 0x6df   : > { %v1384_v50 = vpop.f32.mrf.mxu1 }
 0x6e0   : > { %2075 = vmatmul.mubr.msk.f32.vlgmr.msra.gmra.mxu1 %vm709_vm2, %v1384_v50 }
 0x6e1   : > { %2085 = vmatpush3.msk.msra.mxu1 %vm809_vm9, %v1564_v51  ;;  %v2071_v52 = vpop.f32.mrf.mxu1  ;;  %2088 = vmatprep.mubr.msk.f32.mxu1 %vm2226_vm1, %v2225_v2 }
 0x6e2   : > { %2086 = vmatprep.subr.mxu1 %v2225_v2 }
 0x6e3   : > { %2087 = vmatpush3.msra.mxu1 %v1562_v53 }
 0x6e4   : > { %2089 = vmatmul.mubr.msk.f32.vlgmr.msra.gmra.mxu1 %vm791_vm8, %v1560_v54  ;;  %2091 = vmatprep.subr.mxu1 %v2225_v2 }
 0x6e5   : > { %2093 = vmatprep.mubr.msk.f32.mxu1 %vm2226_vm1, %v2225_v2  ;;  %2092 = vmatpush3.msra.mxu1 %v692_v55 }
 0x7a0   : > { %v1457_v57 = vpop.f32.mrf.mxu1 }
 0x7a1   : > { %v1461_v58 = vadd.f32 %v1457_v57, %v1206_v56 }
 0x7a2   : > { %v2076_v59 = vpop.f32.mrf.mxu1 }
 0x7a4   : > { %v1637_v60 = vpop.f32.mrf.mxu1 }
 0x7a5   : > { %2094 = vmatmul.mubr.msk.f32.vlgmr.msra.gmra.mxu1 %vm709_vm2, %v1637_v60 }
 0x7a6   : > { %v2090_v61 = vpop.f32.mrf.mxu1 }
 0x865   : > { %v1710_v62 = vpop.f32.mrf.mxu1 }
 0x866   : > { %v1714_v2 = vadd.f32 %v1710_v62, %v1461_v58 }
 0x867   : > { %v2095_v63 = vpop.f32.mrf.mxu1 }
 0x868   : > { %v1715_v0 = vadd.f32 %v1714_v2, %v2386_v11 }
 0x86a   : > { %v1716_v1 = vsel %vm451_vm0, %v1715_v0, 0.0 }
 0x86b   : > { %1717 = vadd.xlane.f32.xlu0 %v1716_v1 }
 0x8f4   : > { %v1718_v3 = vpop.xlane.xlu0 %1717 }
 0x8f5   : > { %v1720_v4 = vmul.f32 0.03125, %v1718_v3 }
 0x8f7   : > { %v1721_v5 = vsub.f32 %v1715_v0, %v1720_v4 }
 0x8f9   : > { %v1722_v6 = vmul.f32 %v1721_v5, %v1721_v5 }
 0x8fb   : > { %v1723_v7 = vsel %vm451_vm0, %v1722_v6, 0.0 }
 0x8fc   : > { %1724 = vadd.xlane.f32.xlu1 %v1723_v7 }
 0x8fd   : > { %2176 = shalt.err (!%p2173_p3)
}
 0x8fe   : > { %s2177_s13 = scalar_lea.hbm %s2587_s30, 512  ;;  %s2181_s25 = scalar_lea.hbm %s2655_s11, 1024 }
 0x8ff   : > { %p2178_p4 = scmp.ne.s32.totalorder %s2587_s30, %s2177_s13  ;;  %p2182_p9 = scmp.lt.s32.totalorder %s2587_s30, %s2655_s11 }
 0x900   : > { %p2183_p10 = scmp.lt.s32.totalorder %s2181_s25, %s2177_s13 }
 0x901   : > { %p2179_p7 = pnand %p2178_p4, %p2332_p5 }
 0x902   : > { %p2184_p11 = por %p2183_p10, %p2182_p9 }
 0x903   : > { %p2180_p8 = pneg %p2179_p7 }
 0x905   : > { %p2185_p12 = pnand %p2184_p11, %p2180_p8 }
 0x907   : > { %2188 = shalt.err (!%p2185_p12)
}
 0x908   : > { %s2232_s12 = smov 128   ;;  %s2233_s26 = smov 8   ;;  %v1929_v12 = vld [vmem:[%s2652_s8] ss:$0 sm:$0xff] }
 0x909   : > { %2096 = dma.vmem_to_hbm [thread:$0]  (%p2332_p5), %s2589_s24, 512, %s2587_s30, %s2593_s29, %s2232_s12, %s2232_s12, %s2233_s26  }
 0x90a   : > { %v1930_v14 = vld [vmem:[%s2653_s9] ss:$0 sm:$0xff]  ;;  %s443_s27 = scalar_lea.vmem %s2654_s10, %s2371_s16 }
 0x985   : > { %v1725_v11 = vpop.xlane.xlu1 %1724 }
 0x986   : > { %v1726_v8 = vmul.f32 0.03125, %v1725_v11 }
 0x988   : > { %v1727_v9 = vadd.f32 1e-05, %v1726_v8 }
 0x98a   : > { %2161 = vrsqrt.f32 %v1727_v9 }
 0x997   : > { %v2162_v10 = vpop.eup %2161 }
 0x998   : > { %v1729_v13 = vmul.f32 %v2162_v10, %v1721_v5 }
 0x99a   : > { %v1737_v15 = vmul.f32 %v1929_v12, %v1729_v13 }
 0x99c   : > { %v1745_v16 = vadd.f32 %v1930_v14, %v1737_v15 }
 0x99e   : > { %1746 = vst.msk [vmem:[%s443_s27] sm:$0xff] %vm451_vm0, %v1745_v16 }
 0x99f PF: > { %p2102_p5 = scmp.ge.s32.totalorder %s2223_s20, 2  ;;  %s1790_s24 = sand.u32 1, %s2211_s17  }
 0x9a0   : > { %s1791_s30 = scalar_lea.sflag [#allocation3], %s1790_s24 }
 0x9a1   : > { %p2099_p13 = pnand %p2102_p5, %p2336_p6 }
 0x9a3   : > { %p2100_p0 = pneg %p2099_p13 }
 0x9a5   : > { %2206 = dma.done.wait (%p2100_p0), %s1791_s30, 512  }
 0x9a6   : > { %2208 = vsyncadd (%p2100_p0), %s1791_s30, 4294966784  ;;  %s2663_s29 = sld [smem:[#allocation5_spill]]  ;;  %p22_p1 = scmp.ge.s32.totalorder %s2319_s23, 4  }
 0x9a7   : > { %s2664_s17 = smov %s2215_s18  ;;  %s2665_s18 = smov %s2219_s19 }
 0x9a8   : > { %s2667_s20 = smov %s2319_s23  ;;  %24 = sbr.rel (!%p22_p1) target bundleno = 5 (0x5), region = 119 }
 0x9ac   : > { %s2666_s19 = smov %s2663_s29 }
 0x9ad   :  { %1796 = vsyncpa [#allocation3], 1 }
 0x9ae   :  { %1798 = vsyncpa [#allocation3 + $0x1], 1 }

</bundles_post_ra>
